<compile_context>
chip_gen: v7x
topology: tpu7x:2x2x1
jax: 0.10.0
libtpu: 0.0.40
codegen_flags: <defaults>
</compile_context>

<pallas_src>
import functools
import jax
import jax.numpy as jnp
from jax import lax
from jax.experimental import pallas as pl
from jax.experimental.pallas import tpu as pltpu  # noqa: F401  (TPU backend import)


# ------------------------------ fused Pallas kernel -------------------------------

def fused_gpt_kernel(ids_ref, t_ref, wpe_ref, time_w_ref, time_b_ref, wte_ref,
                     lnf_ref, vec_ref, wq_ref, wk_ref, wv_ref, bq_ref, bk_ref,
                     bv_ref, wp_ref, fc_w_ref, mlp_w_ref, logits_ref,
                     *, B, S, H, n_head, n_layer):
    dH = H // n_head
    F = fc_w_ref.shape[-1]          # 4H
    Vp = wte_ref.shape[0]           # vocab padded to a lane-dense width (>=128)

    def layer_norm(x, g, b):
        mu = jnp.mean(x, axis=-1, keepdims=True)
        var = jnp.mean((x - mu) ** 2, axis=-1, keepdims=True)
        return (x - mu) * lax.rsqrt(var + 1e-5) * g + b

    # ---- embeddings: one-hot token gather + positional bcast + time Linear(1,H) ----
    ids = ids_ref[...]                                                   # [B,S,1] i32
    onehot = (lax.broadcasted_iota(jnp.int32, (B, S, Vp), 2) == ids
              ).astype(jnp.float32)                                      # [B,S,Vp]
    tok = jnp.einsum('bsv,vh->bsh', onehot, wte_ref[...],
                     preferred_element_type=jnp.float32)                 # [B,S,H]
    # Linear(1,H): pure VPU broadcast multiply-add (no K=1 MXU matmul)
    time_emb = t_ref[...] * time_w_ref[...] + time_b_ref[...]            # [B,S,H]
    x = tok + wpe_ref[...][None] + time_emb                              # pos bcast

    # causal mask built in-kernel (no [M,M] mask input; per-batch [S,S] scores)
    rows = lax.broadcasted_iota(jnp.int32, (S, S), 0)
    cols = lax.broadcasted_iota(jnp.int32, (S, S), 1)
    causal = (cols <= rows)[None, :, :]                                  # [1,S,S]

    def layer_body(l, x):
        pv = vec_ref[l]                                  # [8, 128] packed vectors
        ln1_g, ln1_b = pv[0:1, :H], pv[1:2, :H]
        ln2_g, ln2_b = pv[2:3, :H], pv[3:4, :H]
        proj_b, mlp_b = pv[4:5, :H], pv[5:6, :H]
        fc_b = pv[6:7, :F]
        wq_l, wk_l, wv_l = wq_ref[l], wk_ref[l], wv_ref[l]               # [nh,H,dH]
        bq_l, bk_l, bv_l = bq_ref[l], bk_ref[l], bv_ref[l]               # [nh,1,dH]
        wp_l = wp_ref[l]                                                 # [nh,dH,H]

        # ---- causal self-attention (1/sqrt(dH) pre-folded into wq/bq on host) ----
        h = layer_norm(x, ln1_g, ln1_b)
        attn = jnp.zeros_like(x)
        for hh in range(n_head):    # head-split weights: no lane slicing / lane concat
            q = jnp.einsum('bsh,hd->bsd', h, wq_l[hh],
                           preferred_element_type=jnp.float32) + bq_l[hh]
            k = jnp.einsum('bsh,hd->bsd', h, wk_l[hh],
                           preferred_element_type=jnp.float32) + bk_l[hh]
            v = jnp.einsum('bsh,hd->bsd', h, wv_l[hh],
                           preferred_element_type=jnp.float32) + bv_l[hh]
            s = jnp.einsum('bqd,bkd->bqk', q, k,
                           preferred_element_type=jnp.float32)           # [B,S,S]
            s = jnp.where(causal, s, -1e9)                               # f32 mask fill
            m_ = jnp.max(s, axis=-1, keepdims=True)
            e = jnp.exp(s - m_)
            p = e * pl.reciprocal(jnp.sum(e, axis=-1, keepdims=True), approx=True)
            o = jnp.einsum('bqk,bkd->bqd', p, v,
                           preferred_element_type=jnp.float32)           # [B,S,dH]
            # accumulate through this head's rows of the output projection
            attn = attn + jnp.einsum('bsd,dh->bsh', o, wp_l[hh],
                                     preferred_element_type=jnp.float32)
        x = x + attn + proj_b

        # ---- MLP (gelu_new); elementwise math stays f32 ---------------------------
        h2 = layer_norm(x, ln2_g, ln2_b)
        y = jnp.einsum('bsh,hf->bsf', h2, fc_w_ref[l],
                       preferred_element_type=jnp.float32) + fc_b        # [B,S,4H]
        g = 0.5 * y * (1.0 + jnp.tanh(0.7978845608028654
                                      * (y + 0.044715 * y * y * y)))
        x = x + jnp.einsum('bsf,fh->bsh', g, mlp_w_ref[l],
                           preferred_element_type=jnp.float32) + mlp_b
        return x

    x = lax.fori_loop(0, n_layer, layer_body, x, unroll=True)

    # ---- final LN + tied lm_head (padded vocab columns sliced off in wrapper) -----
    xf = layer_norm(x, lnf_ref[0:1, :], lnf_ref[1:2, :])
    logits_ref[...] = jnp.einsum('bsh,vh->bsv', xf, wte_ref[...],
                                 preferred_element_type=jnp.float32)     # [B,S,Vp]


# --------------------------- parameter construction -------------------------------

def init_params(key, vocab, hidden, n_layer, n_head, max_pos):
    ks = iter(jax.random.split(key, 6 + 12 * n_layer))
    nrm = lambda shp, s=0.02: (s * jax.random.normal(next(ks), shp)).astype(jnp.float32)
    p = {
        'wte': nrm((vocab, hidden)),
        'wpe': nrm((max_pos, hidden)),
        'lnf_g': 1.0 + nrm((1, hidden), 0.05),
        'lnf_b': nrm((1, hidden), 0.05),
        'time_w': nrm((1, hidden)),
        'time_b': nrm((1, hidden)),
        # combine_layer weights exist in the module but are unused in forward.
        'layers': [],
    }
    for _ in range(n_layer):
        p['layers'].append({
            'ln1_g': 1.0 + nrm((1, hidden), 0.05),
            'ln1_b': nrm((1, hidden), 0.05),
            'attn_w': nrm((hidden, 3 * hidden)),
            'attn_b': nrm((1, 3 * hidden)),
            'attn_proj_w': nrm((hidden, hidden)),
            'attn_proj_b': nrm((1, hidden)),
            'ln2_g': 1.0 + nrm((1, hidden), 0.05),
            'ln2_b': nrm((1, hidden), 0.05),
            'fc_w': nrm((hidden, 4 * hidden)),
            'fc_b': nrm((1, 4 * hidden)),
            'mlp_proj_w': nrm((4 * hidden, hidden)),
            'mlp_proj_b': nrm((1, hidden)),
        })
    return p


def pack_params(params, n_head):
    """One-time host-side weight prep (outside jit): head-split QKV / out-proj,
    fold 1/sqrt(dH) into Q, pack small per-layer vectors into one slab."""
    V, H = params['wte'].shape
    dH = H // n_head
    F = 4 * H
    Vp = max(128, ((V + 127) // 128) * 128)
    PADW = max(128, ((F + 127) // 128) * 128)
    scale = 1.0 / (dH ** 0.5)

    def split_cols(w):                       # [H, H] -> [n_head, H, dH]
        return w.reshape(H, n_head, dH).transpose(1, 0, 2)

    wq, wk, wv, bq, bk, bv, wp, fcw, mlpw, vec = ([] for _ in range(10))
    for lyr in params['layers']:
        aw, ab = lyr['attn_w'], lyr['attn_b']
        wq.append(split_cols(aw[:, :H]) * scale)
        wk.append(split_cols(aw[:, H:2 * H]))
        wv.append(split_cols(aw[:, 2 * H:]))
        bq.append(ab[0, :H].reshape(n_head, 1, dH) * scale)
        bk.append(ab[0, H:2 * H].reshape(n_head, 1, dH))
        bv.append(ab[0, 2 * H:].reshape(n_head, 1, dH))
        wp.append(lyr['attn_proj_w'].reshape(n_head, dH, H))
        fcw.append(lyr['fc_w'])
        mlpw.append(lyr['mlp_proj_w'])
        v = jnp.zeros((8, PADW), jnp.float32)
        v = v.at[0, :H].set(lyr['ln1_g'][0]).at[1, :H].set(lyr['ln1_b'][0])
        v = v.at[2, :H].set(lyr['ln2_g'][0]).at[3, :H].set(lyr['ln2_b'][0])
        v = v.at[4, :H].set(lyr['attn_proj_b'][0]).at[5, :H].set(lyr['mlp_proj_b'][0])
        v = v.at[6, :F].set(lyr['fc_b'][0])
        vec.append(v)

    return {
        'wte_pad': jnp.zeros((Vp, H), jnp.float32).at[:V].set(params['wte']),
        'wpe': params['wpe'],
        'time_w': params['time_w'],
        'time_b': params['time_b'],
        'lnf': jnp.concatenate([params['lnf_g'], params['lnf_b']], axis=0),   # [2,H]
        'vec': jnp.stack(vec),          # [L, 8, 128]
        'wq': jnp.stack(wq), 'wk': jnp.stack(wk), 'wv': jnp.stack(wv),
        'bq': jnp.stack(bq), 'bk': jnp.stack(bk), 'bv': jnp.stack(bv),
        'wp': jnp.stack(wp),
        'fc_w': jnp.stack(fcw), 'mlp_w': jnp.stack(mlpw),
    }


# ------------------------------- forward (Pallas) ----------------------------------

def custom_gpt_forward(packed, input_ids, times, n_head, vocab):
    B, S = input_ids.shape
    Vp, H = packed['wte_pad'].shape
    L = packed['wq'].shape[0]

    ids = input_ids.reshape(B, S, 1).astype(jnp.int32)
    t = times.reshape(B, S, 1).astype(jnp.float32)
    wpe_s = packed['wpe'][:S]

    kernel = functools.partial(fused_gpt_kernel, B=B, S=S, H=H,
                               n_head=n_head, n_layer=L)

    # Single invocation (no grid): all weights for this toy config fit comfortably
    # in VMEM, so everything is fetched once and stays resident.
    logits_pad = pl.pallas_call(
        kernel,
        out_shape=jax.ShapeDtypeStruct((B, S, Vp), jnp.float32),
    )(ids, t, wpe_s, packed['time_w'], packed['time_b'], packed['wte_pad'],
      packed['lnf'], packed['vec'], packed['wq'], packed['wk'], packed['wv'],
      packed['bq'], packed['bk'], packed['bv'], packed['wp'],
      packed['fc_w'], packed['mlp_w'])

    return logits_pad[:, :, :vocab]


# ------------------------------ plain-JAX reference --------------------------------

def ref_forward(params, input_ids, times, n_head):
    B, S = input_ids.shape
    V, H = params['wte'].shape
    dH = H // n_head

    def ln(x, g, b):
        mu = jnp.mean(x, -1, keepdims=True)
        var = jnp.mean((x - mu) ** 2, -1, keepdims=True)
        return (x - mu) * lax.rsqrt(var + 1e-5) * g + b

    def gelu_new(y):
        return 0.5 * y * (1.0 + jnp.tanh(0.7978845608028654 * (y + 0.044715 * y ** 3)))

    tok = jnp.take(params['wte'], input_ids, axis=0)
    x = tok + params['wpe'][:S][None] + times[..., None] @ params['time_w'] + params['time_b']
    for lyr in params['layers']:
        h = ln(x, lyr['ln1_g'], lyr['ln1_b'])
        qkv = h @ lyr['attn_w'] + lyr['attn_b']
        q, k, v = jnp.split(qkv, 3, axis=-1)
        sh = lambda a: a.reshape(B, S, n_head, dH).transpose(0, 2, 1, 3)
        q, k, v = sh(q), sh(k), sh(v)
        s = jnp.einsum('bhqd,bhkd->bhqk', q, k) / (dH ** 0.5)
        cm = jnp.tril(jnp.ones((S, S), bool))
        s = jnp.where(cm[None, None], s, -1e9)
        p = jax.nn.softmax(s, axis=-1)
        a = jnp.einsum('bhqk,bhkd->bhqd', p, v).transpose(0, 2, 1, 3).reshape(B, S, H)
        x = x + a @ lyr['attn_proj_w'] + lyr['attn_proj_b']
        h = ln(x, lyr['ln2_g'], lyr['ln2_b'])
        h = gelu_new(h @ lyr['fc_w'] + lyr['fc_b'])
        x = x + h @ lyr['mlp_proj_w'] + lyr['mlp_proj_b']
    x = ln(x, params['lnf_g'], params['lnf_b'])
    return x @ params['wte'].T


# -------------------------------------- main ---------------------------------------

if __name__ == "__main__":
    VOCAB, HIDDEN, N_LAYER, N_HEAD, MAX_POS = 64, 32, 2, 2, 32
    B, S = 2, 8

    root = jax.random.PRNGKey(0)
    kp, ki, kt = jax.random.split(root, 3)
    params = init_params(kp, VOCAB, HIDDEN, N_LAYER, N_HEAD, MAX_POS)

    input_ids = jax.random.randint(ki, (B, S), 0, VOCAB, dtype=jnp.int32)
    times = jax.random.uniform(kt, (B, S), dtype=jnp.float32)

    packed = pack_params(params, N_HEAD)        # one-time host-side weight prep
    fwd = jax.jit(custom_gpt_forward, static_argnums=(3, 4))
    logits = jax.block_until_ready(fwd(packed, input_ids, times, N_HEAD, VOCAB))
    assert logits.shape == (B, S, VOCAB)

    ref = ref_forward(params, input_ids, times, N_HEAD)
    assert jnp.allclose(logits, ref, atol=3e-2, rtol=3e-2), "mismatch vs JAX reference"

    print("KERNEL_OK")
</pallas_src>

<mosaic_0001>
module attributes {stable_mosaic.version = 11 : i64} {
  func.func @fused_gpt_kernel(%arg0: memref<2x8x1xi32, #tpu.memory_space<vmem>>, %arg1: memref<2x8x1xf32, #tpu.memory_space<vmem>>, %arg2: memref<8x32xf32, #tpu.memory_space<vmem>>, %arg3: memref<1x32xf32, #tpu.memory_space<vmem>>, %arg4: memref<1x32xf32, #tpu.memory_space<vmem>>, %arg5: memref<128x32xf32, #tpu.memory_space<vmem>>, %arg6: memref<2x32xf32, #tpu.memory_space<vmem>>, %arg7: memref<2x8x128xf32, #tpu.memory_space<vmem>>, %arg8: memref<2x2x32x16xf32, #tpu.memory_space<vmem>>, %arg9: memref<2x2x32x16xf32, #tpu.memory_space<vmem>>, %arg10: memref<2x2x32x16xf32, #tpu.memory_space<vmem>>, %arg11: memref<2x2x1x16xf32, #tpu.memory_space<vmem>>, %arg12: memref<2x2x1x16xf32, #tpu.memory_space<vmem>>, %arg13: memref<2x2x1x16xf32, #tpu.memory_space<vmem>>, %arg14: memref<2x2x16x32xf32, #tpu.memory_space<vmem>>, %arg15: memref<2x32x128xf32, #tpu.memory_space<vmem>>, %arg16: memref<2x128x32xf32, #tpu.memory_space<vmem>>, %arg17: memref<2x8x128xf32, #tpu.memory_space<vmem>>) attributes {dimension_semantics = [], scalar_prefetch = 0 : i64, scratch_operands = 0 : i64, tpu.core_type = #tpu.core_type<tc>} {
    %c0 = arith.constant 0 : index
    %c0_0 = arith.constant 0 : index
    %c0_1 = arith.constant 0 : index
    %0 = vector.load %arg0[%c0, %c0_0, %c0_1] : memref<2x8x1xi32, #tpu.memory_space<vmem>>, vector<2x8x1xi32>
    %1 = tpu.iota {dimensions = array<i32: 2>} : vector<2x8x128xi32>
    %2 = vector.broadcast %0 : vector<2x8x1xi32> to vector<2x8x128xi32>
    %3 = arith.cmpi eq, %1, %2 : vector<2x8x128xi32>
    %4 = arith.extui %3 : vector<2x8x128xi1> to vector<2x8x128xi32>
    %5 = arith.sitofp %4 : vector<2x8x128xi32> to vector<2x8x128xf32>
    %c0_2 = arith.constant 0 : index
    %c0_3 = arith.constant 0 : index
    %6 = vector.load %arg5[%c0_2, %c0_3] : memref<128x32xf32, #tpu.memory_space<vmem>>, vector<128x32xf32>
    "tpu.trace_start"() <{level = 10 : i32, message = "bsv,vh->bsh"}> : () -> ()
    %cst = arith.constant dense<0.000000e+00> : vector<2x8x32xf32>
    %7 = tpu.matmul %5, %6, %cst {dimension_numbers = #tpu.dot_dimension_numbers<[2], [0], [0, 1], [1], [0, 0, 0, 1, 1, 1], [], []>} : vector<2x8x128xf32>, vector<128x32xf32>, vector<2x8x32xf32> -> vector<2x8x32xf32>
    "tpu.trace_stop"() : () -> ()
    %c0_4 = arith.constant 0 : index
    %c0_5 = arith.constant 0 : index
    %c0_6 = arith.constant 0 : index
    %8 = vector.load %arg1[%c0_4, %c0_5, %c0_6] : memref<2x8x1xf32, #tpu.memory_space<vmem>>, vector<2x8x1xf32>
    %c0_7 = arith.constant 0 : index
    %c0_8 = arith.constant 0 : index
    %9 = vector.load %arg3[%c0_7, %c0_8] : memref<1x32xf32, #tpu.memory_space<vmem>>, vector<1x32xf32>
    %10 = vector.shape_cast %9 : vector<1x32xf32> to vector<1x1x32xf32>
    %11 = vector.broadcast %8 : vector<2x8x1xf32> to vector<2x8x32xf32>
    %12 = vector.broadcast %10 : vector<1x1x32xf32> to vector<2x8x32xf32>
    %13 = arith.mulf %11, %12 : vector<2x8x32xf32>
    %c0_9 = arith.constant 0 : index
    %c0_10 = arith.constant 0 : index
    %14 = vector.load %arg4[%c0_9, %c0_10] : memref<1x32xf32, #tpu.memory_space<vmem>>, vector<1x32xf32>
    %15 = vector.shape_cast %14 : vector<1x32xf32> to vector<1x1x32xf32>
    %16 = vector.broadcast %15 : vector<1x1x32xf32> to vector<2x8x32xf32>
    %17 = arith.addf %13, %16 : vector<2x8x32xf32>
    %c0_11 = arith.constant 0 : index
    %c0_12 = arith.constant 0 : index
    %18 = vector.load %arg2[%c0_11, %c0_12] : memref<8x32xf32, #tpu.memory_space<vmem>>, vector<8x32xf32>
    %19 = vector.shape_cast %18 : vector<8x32xf32> to vector<1x8x32xf32>
    %20 = vector.broadcast %19 : vector<1x8x32xf32> to vector<2x8x32xf32>
    %21 = arith.addf %7, %20 : vector<2x8x32xf32>
    %22 = arith.addf %21, %17 : vector<2x8x32xf32>
    %23 = tpu.iota {dimensions = array<i32: 0>} : vector<8x8xi32>
    %24 = tpu.iota {dimensions = array<i32: 1>} : vector<8x8xi32>
    %25 = arith.cmpi sle, %24, %23 : vector<8x8xi32>
    %26 = vector.shape_cast %25 : vector<8x8xi1> to vector<1x8x8xi1>
    %c0_i32 = arith.constant 0 : i32
    %27 = arith.index_cast %c0_i32 : i32 to index
    %c0_13 = arith.constant 0 : index
    %c0_14 = arith.constant 0 : index
    %28 = vector.load %arg7[%27, %c0_13, %c0_14] : memref<2x8x128xf32, #tpu.memory_space<vmem>>, vector<1x8x128xf32>
    %29 = vector.shape_cast %28 : vector<1x8x128xf32> to vector<8x128xf32>
    %30 = vector.extract_strided_slice %29 {offsets = [0, 0], sizes = [1, 32], strides = [1, 1]} : vector<8x128xf32> to vector<1x32xf32>
    %31 = vector.extract_strided_slice %29 {offsets = [1, 0], sizes = [1, 32], strides = [1, 1]} : vector<8x128xf32> to vector<1x32xf32>
    %32 = vector.extract_strided_slice %29 {offsets = [2, 0], sizes = [1, 32], strides = [1, 1]} : vector<8x128xf32> to vector<1x32xf32>
    %33 = vector.extract_strided_slice %29 {offsets = [3, 0], sizes = [1, 32], strides = [1, 1]} : vector<8x128xf32> to vector<1x32xf32>
    %34 = vector.extract_strided_slice %29 {offsets = [4, 0], sizes = [1, 32], strides = [1, 1]} : vector<8x128xf32> to vector<1x32xf32>
    %35 = vector.extract_strided_slice %29 {offsets = [5, 0], sizes = [1, 32], strides = [1, 1]} : vector<8x128xf32> to vector<1x32xf32>
    %36 = vector.extract_strided_slice %29 {offsets = [6, 0], sizes = [1, 128], strides = [1, 1]} : vector<8x128xf32> to vector<1x128xf32>
    %37 = arith.index_cast %c0_i32 : i32 to index
    %c0_15 = arith.constant 0 : index
    %c0_16 = arith.constant 0 : index
    %c0_17 = arith.constant 0 : index
    %38 = vector.load %arg8[%37, %c0_15, %c0_16, %c0_17] : memref<2x2x32x16xf32, #tpu.memory_space<vmem>>, vector<1x2x32x16xf32>
    %39 = vector.shape_cast %38 : vector<1x2x32x16xf32> to vector<2x32x16xf32>
    %40 = arith.index_cast %c0_i32 : i32 to index
    %c0_18 = arith.constant 0 : index
    %c0_19 = arith.constant 0 : index
    %c0_20 = arith.constant 0 : index
    %41 = vector.load %arg9[%40, %c0_18, %c0_19, %c0_20] : memref<2x2x32x16xf32, #tpu.memory_space<vmem>>, vector<1x2x32x16xf32>
    %42 = vector.shape_cast %41 : vector<1x2x32x16xf32> to vector<2x32x16xf32>
    %43 = arith.index_cast %c0_i32 : i32 to index
    %c0_21 = arith.constant 0 : index
    %c0_22 = arith.constant 0 : index
    %c0_23 = arith.constant 0 : index
    %44 = vector.load %arg10[%43, %c0_21, %c0_22, %c0_23] : memref<2x2x32x16xf32, #tpu.memory_space<vmem>>, vector<1x2x32x16xf32>
    %45 = vector.shape_cast %44 : vector<1x2x32x16xf32> to vector<2x32x16xf32>
    %46 = arith.index_cast %c0_i32 : i32 to index
    %c0_24 = arith.constant 0 : index
    %c0_25 = arith.constant 0 : index
    %c0_26 = arith.constant 0 : index
    %47 = vector.load %arg11[%46, %c0_24, %c0_25, %c0_26] : memref<2x2x1x16xf32, #tpu.memory_space<vmem>>, vector<1x2x1x16xf32>
    %48 = vector.shape_cast %47 : vector<1x2x1x16xf32> to vector<2x1x16xf32>
    %49 = arith.index_cast %c0_i32 : i32 to index
    %c0_27 = arith.constant 0 : index
    %c0_28 = arith.constant 0 : index
    %c0_29 = arith.constant 0 : index
    %50 = vector.load %arg12[%49, %c0_27, %c0_28, %c0_29] : memref<2x2x1x16xf32, #tpu.memory_space<vmem>>, vector<1x2x1x16xf32>
    %51 = vector.shape_cast %50 : vector<1x2x1x16xf32> to vector<2x1x16xf32>
    %52 = arith.index_cast %c0_i32 : i32 to index
    %c0_30 = arith.constant 0 : index
    %c0_31 = arith.constant 0 : index
    %c0_32 = arith.constant 0 : index
    %53 = vector.load %arg13[%52, %c0_30, %c0_31, %c0_32] : memref<2x2x1x16xf32, #tpu.memory_space<vmem>>, vector<1x2x1x16xf32>
    %54 = vector.shape_cast %53 : vector<1x2x1x16xf32> to vector<2x1x16xf32>
    %55 = arith.index_cast %c0_i32 : i32 to index
    %c0_33 = arith.constant 0 : index
    %c0_34 = arith.constant 0 : index
    %c0_35 = arith.constant 0 : index
    %56 = vector.load %arg14[%55, %c0_33, %c0_34, %c0_35] : memref<2x2x16x32xf32, #tpu.memory_space<vmem>>, vector<1x2x16x32xf32>
    %57 = vector.shape_cast %56 : vector<1x2x16x32xf32> to vector<2x16x32xf32>
    %cst_36 = arith.constant dense<0.000000e+00> : vector<2x8xf32>
    %58 = vector.multi_reduction <add>, %22, %cst_36 [2] : vector<2x8x32xf32> to vector<2x8xf32>
    %59 = vector.shape_cast %58 : vector<2x8xf32> to vector<2x8x1xf32>
    %cst_37 = arith.constant 3.200000e+01 : f32
    %60 = vector.broadcast %cst_37 : f32 to vector<2x8x1xf32>
    %61 = arith.divf %59, %60 : vector<2x8x1xf32>
    %62 = vector.broadcast %61 : vector<2x8x1xf32> to vector<2x8x32xf32>
    %63 = arith.subf %22, %62 : vector<2x8x32xf32>
    %64 = arith.mulf %63, %63 : vector<2x8x32xf32>
    %cst_38 = arith.constant dense<0.000000e+00> : vector<2x8xf32>
    %65 = vector.multi_reduction <add>, %64, %cst_38 [2] : vector<2x8x32xf32> to vector<2x8xf32>
    %66 = vector.shape_cast %65 : vector<2x8xf32> to vector<2x8x1xf32>
    %cst_39 = arith.constant 3.200000e+01 : f32
    %67 = vector.broadcast %cst_39 : f32 to vector<2x8x1xf32>
    %68 = arith.divf %66, %67 : vector<2x8x1xf32>
    %69 = vector.broadcast %61 : vector<2x8x1xf32> to vector<2x8x32xf32>
    %70 = arith.subf %22, %69 : vector<2x8x32xf32>
    %cst_40 = arith.constant 9.99999974E-6 : f32
    %71 = vector.broadcast %cst_40 : f32 to vector<2x8x1xf32>
    %72 = arith.addf %68, %71 : vector<2x8x1xf32>
    %73 = math.rsqrt %72 : vector<2x8x1xf32>
    %74 = vector.broadcast %73 : vector<2x8x1xf32> to vector<2x8x32xf32>
    %75 = arith.mulf %70, %74 : vector<2x8x32xf32>
    %76 = vector.shape_cast %30 : vector<1x32xf32> to vector<1x1x32xf32>
    %77 = vector.broadcast %76 : vector<1x1x32xf32> to vector<2x8x32xf32>
    %78 = arith.mulf %75, %77 : vector<2x8x32xf32>
    %79 = vector.shape_cast %31 : vector<1x32xf32> to vector<1x1x32xf32>
    %80 = vector.broadcast %79 : vector<1x1x32xf32> to vector<2x8x32xf32>
    %81 = arith.addf %78, %80 : vector<2x8x32xf32>
    %cst_41 = arith.constant 0.000000e+00 : f32
    %82 = vector.broadcast %cst_41 : f32 to vector<2x8x32xf32>
    %83 = vector.extract_strided_slice %39 {offsets = [0, 0, 0], sizes = [1, 32, 16], strides = [1, 1, 1]} : vector<2x32x16xf32> to vector<1x32x16xf32>
    %84 = vector.shape_cast %83 : vector<1x32x16xf32> to vector<32x16xf32>
    "tpu.trace_start"() <{level = 10 : i32, message = "bsh,hd->bsd"}> : () -> ()
    %cst_42 = arith.constant dense<0.000000e+00> : vector<2x8x16xf32>
    %85 = tpu.matmul %81, %84, %cst_42 {dimension_numbers = #tpu.dot_dimension_numbers<[2], [0], [0, 1], [1], [0, 0, 0, 1, 1, 1], [], []>} : vector<2x8x32xf32>, vector<32x16xf32>, vector<2x8x16xf32> -> vector<2x8x16xf32>
    "tpu.trace_stop"() : () -> ()
    %86 = vector.extract_strided_slice %48 {offsets = [0, 0, 0], sizes = [1, 1, 16], strides = [1, 1, 1]} : vector<2x1x16xf32> to vector<1x1x16xf32>
    %87 = vector.shape_cast %86 : vector<1x1x16xf32> to vector<1x16xf32>
    %88 = vector.shape_cast %87 : vector<1x16xf32> to vector<1x1x16xf32>
    %89 = vector.broadcast %88 : vector<1x1x16xf32> to vector<2x8x16xf32>
    %90 = arith.addf %85, %89 : vector<2x8x16xf32>
    %91 = vector.extract_strided_slice %42 {offsets = [0, 0, 0], sizes = [1, 32, 16], strides = [1, 1, 1]} : vector<2x32x16xf32> to vector<1x32x16xf32>
    %92 = vector.shape_cast %91 : vector<1x32x16xf32> to vector<32x16xf32>
    "tpu.trace_start"() <{level = 10 : i32, message = "bsh,hd->bsd"}> : () -> ()
    %cst_43 = arith.constant dense<0.000000e+00> : vector<2x8x16xf32>
    %93 = tpu.matmul %81, %92, %cst_43 {dimension_numbers = #tpu.dot_dimension_numbers<[2], [0], [0, 1], [1], [0, 0, 0, 1, 1, 1], [], []>} : vector<2x8x32xf32>, vector<32x16xf32>, vector<2x8x16xf32> -> vector<2x8x16xf32>
    "tpu.trace_stop"() : () -> ()
    %94 = vector.extract_strided_slice %51 {offsets = [0, 0, 0], sizes = [1, 1, 16], strides = [1, 1, 1]} : vector<2x1x16xf32> to vector<1x1x16xf32>
    %95 = vector.shape_cast %94 : vector<1x1x16xf32> to vector<1x16xf32>
    %96 = vector.shape_cast %95 : vector<1x16xf32> to vector<1x1x16xf32>
    %97 = vector.broadcast %96 : vector<1x1x16xf32> to vector<2x8x16xf32>
    %98 = arith.addf %93, %97 : vector<2x8x16xf32>
    %99 = vector.extract_strided_slice %45 {offsets = [0, 0, 0], sizes = [1, 32, 16], strides = [1, 1, 1]} : vector<2x32x16xf32> to vector<1x32x16xf32>
    %100 = vector.shape_cast %99 : vector<1x32x16xf32> to vector<32x16xf32>
    "tpu.trace_start"() <{level = 10 : i32, message = "bsh,hd->bsd"}> : () -> ()
    %cst_44 = arith.constant dense<0.000000e+00> : vector<2x8x16xf32>
    %101 = tpu.matmul %81, %100, %cst_44 {dimension_numbers = #tpu.dot_dimension_numbers<[2], [0], [0, 1], [1], [0, 0, 0, 1, 1, 1], [], []>} : vector<2x8x32xf32>, vector<32x16xf32>, vector<2x8x16xf32> -> vector<2x8x16xf32>
    "tpu.trace_stop"() : () -> ()
    %102 = vector.extract_strided_slice %54 {offsets = [0, 0, 0], sizes = [1, 1, 16], strides = [1, 1, 1]} : vector<2x1x16xf32> to vector<1x1x16xf32>
    %103 = vector.shape_cast %102 : vector<1x1x16xf32> to vector<1x16xf32>
    %104 = vector.shape_cast %103 : vector<1x16xf32> to vector<1x1x16xf32>
    %105 = vector.broadcast %104 : vector<1x1x16xf32> to vector<2x8x16xf32>
    %106 = arith.addf %101, %105 : vector<2x8x16xf32>
    "tpu.trace_start"() <{level = 10 : i32, message = "bqd,bkd->bqk"}> : () -> ()
    %cst_45 = arith.constant dense<0.000000e+00> : vector<2x8x8xf32>
    %107 = tpu.matmul %90, %98, %cst_45 {dimension_numbers = #tpu.dot_dimension_numbers<[2], [2], [1], [1], [0, 0, 0, 1, 1, 1], [0], [0]>} : vector<2x8x16xf32>, vector<2x8x16xf32>, vector<2x8x8xf32> -> vector<2x8x8xf32>
    %cst_46 = arith.constant -1.000000e+09 : f32
    "tpu.trace_stop"() : () -> ()
    %108 = vector.shape_cast %26 : vector<1x8x8xi1> to vector<1x8x8xi1>
    %109 = vector.broadcast %108 : vector<1x8x8xi1> to vector<2x8x8xi1>
    %110 = vector.broadcast %cst_46 : f32 to vector<2x8x8xf32>
    %111 = arith.select %109, %107, %110 : vector<2x8x8xi1>, vector<2x8x8xf32>
    %cst_47 = arith.constant dense<0xFF800000> : vector<2x8xf32>
    %112 = vector.multi_reduction <maximumf>, %111, %cst_47 [2] : vector<2x8x8xf32> to vector<2x8xf32>
    %113 = vector.shape_cast %112 : vector<2x8xf32> to vector<2x8x1xf32>
    %114 = vector.broadcast %113 : vector<2x8x1xf32> to vector<2x8x8xf32>
    %115 = arith.subf %111, %114 : vector<2x8x8xf32>
    %116 = math.exp %115 : vector<2x8x8xf32>
    %cst_48 = arith.constant dense<0.000000e+00> : vector<2x8xf32>
    %117 = vector.multi_reduction <add>, %116, %cst_48 [2] : vector<2x8x8xf32> to vector<2x8xf32>
    %118 = vector.shape_cast %117 : vector<2x8xf32> to vector<2x8x1xf32>
    %119 = tpu.reciprocal %118 {approx = true} : vector<2x8x1xf32> -> vector<2x8x1xf32>
    %120 = vector.broadcast %119 : vector<2x8x1xf32> to vector<2x8x8xf32>
    %121 = arith.mulf %116, %120 : vector<2x8x8xf32>
    "tpu.trace_start"() <{level = 10 : i32, message = "bqk,bkd->bqd"}> : () -> ()
    %cst_49 = arith.constant dense<0.000000e+00> : vector<2x8x16xf32>
    %122 = tpu.matmul %121, %106, %cst_49 {dimension_numbers = #tpu.dot_dimension_numbers<[2], [1], [1], [2], [0, 0, 0, 1, 1, 2], [0], [0]>} : vector<2x8x8xf32>, vector<2x8x16xf32>, vector<2x8x16xf32> -> vector<2x8x16xf32>
    "tpu.trace_stop"() : () -> ()
    %123 = vector.extract_strided_slice %57 {offsets = [0, 0, 0], sizes = [1, 16, 32], strides = [1, 1, 1]} : vector<2x16x32xf32> to vector<1x16x32xf32>
    %124 = vector.shape_cast %123 : vector<1x16x32xf32> to vector<16x32xf32>
    "tpu.trace_start"() <{level = 10 : i32, message = "bsd,dh->bsh"}> : () -> ()
    %cst_50 = arith.constant dense<0.000000e+00> : vector<2x8x32xf32>
    %125 = tpu.matmul %122, %124, %cst_50 {dimension_numbers = #tpu.dot_dimension_numbers<[2], [0], [0, 1], [1], [0, 0, 0, 1, 1, 1], [], []>} : vector<2x8x16xf32>, vector<16x32xf32>, vector<2x8x32xf32> -> vector<2x8x32xf32>
    "tpu.trace_stop"() : () -> ()
    %126 = arith.addf %82, %125 : vector<2x8x32xf32>
    %127 = vector.extract_strided_slice %39 {offsets = [1, 0, 0], sizes = [1, 32, 16], strides = [1, 1, 1]} : vector<2x32x16xf32> to vector<1x32x16xf32>
    %128 = vector.shape_cast %127 : vector<1x32x16xf32> to vector<32x16xf32>
    "tpu.trace_start"() <{level = 10 : i32, message = "bsh,hd->bsd"}> : () -> ()
    %cst_51 = arith.constant dense<0.000000e+00> : vector<2x8x16xf32>
    %129 = tpu.matmul %81, %128, %cst_51 {dimension_numbers = #tpu.dot_dimension_numbers<[2], [0], [0, 1], [1], [0, 0, 0, 1, 1, 1], [], []>} : vector<2x8x32xf32>, vector<32x16xf32>, vector<2x8x16xf32> -> vector<2x8x16xf32>
    "tpu.trace_stop"() : () -> ()
    %130 = vector.extract_strided_slice %48 {offsets = [1, 0, 0], sizes = [1, 1, 16], strides = [1, 1, 1]} : vector<2x1x16xf32> to vector<1x1x16xf32>
    %131 = vector.shape_cast %130 : vector<1x1x16xf32> to vector<1x16xf32>
    %132 = vector.shape_cast %131 : vector<1x16xf32> to vector<1x1x16xf32>
    %133 = vector.broadcast %132 : vector<1x1x16xf32> to vector<2x8x16xf32>
    %134 = arith.addf %129, %133 : vector<2x8x16xf32>
    %135 = vector.extract_strided_slice %42 {offsets = [1, 0, 0], sizes = [1, 32, 16], strides = [1, 1, 1]} : vector<2x32x16xf32> to vector<1x32x16xf32>
    %136 = vector.shape_cast %135 : vector<1x32x16xf32> to vector<32x16xf32>
    "tpu.trace_start"() <{level = 10 : i32, message = "bsh,hd->bsd"}> : () -> ()
    %cst_52 = arith.constant dense<0.000000e+00> : vector<2x8x16xf32>
    %137 = tpu.matmul %81, %136, %cst_52 {dimension_numbers = #tpu.dot_dimension_numbers<[2], [0], [0, 1], [1], [0, 0, 0, 1, 1, 1], [], []>} : vector<2x8x32xf32>, vector<32x16xf32>, vector<2x8x16xf32> -> vector<2x8x16xf32>
    "tpu.trace_stop"() : () -> ()
    %138 = vector.extract_strided_slice %51 {offsets = [1, 0, 0], sizes = [1, 1, 16], strides = [1, 1, 1]} : vector<2x1x16xf32> to vector<1x1x16xf32>
    %139 = vector.shape_cast %138 : vector<1x1x16xf32> to vector<1x16xf32>
    %140 = vector.shape_cast %139 : vector<1x16xf32> to vector<1x1x16xf32>
    %141 = vector.broadcast %140 : vector<1x1x16xf32> to vector<2x8x16xf32>
    %142 = arith.addf %137, %141 : vector<2x8x16xf32>
    %143 = vector.extract_strided_slice %45 {offsets = [1, 0, 0], sizes = [1, 32, 16], strides = [1, 1, 1]} : vector<2x32x16xf32> to vector<1x32x16xf32>
    %144 = vector.shape_cast %143 : vector<1x32x16xf32> to vector<32x16xf32>
    "tpu.trace_start"() <{level = 10 : i32, message = "bsh,hd->bsd"}> : () -> ()
    %cst_53 = arith.constant dense<0.000000e+00> : vector<2x8x16xf32>
    %145 = tpu.matmul %81, %144, %cst_53 {dimension_numbers = #tpu.dot_dimension_numbers<[2], [0], [0, 1], [1], [0, 0, 0, 1, 1, 1], [], []>} : vector<2x8x32xf32>, vector<32x16xf32>, vector<2x8x16xf32> -> vector<2x8x16xf32>
    "tpu.trace_stop"() : () -> ()
    %146 = vector.extract_strided_slice %54 {offsets = [1, 0, 0], sizes = [1, 1, 16], strides = [1, 1, 1]} : vector<2x1x16xf32> to vector<1x1x16xf32>
    %147 = vector.shape_cast %146 : vector<1x1x16xf32> to vector<1x16xf32>
    %148 = vector.shape_cast %147 : vector<1x16xf32> to vector<1x1x16xf32>
    %149 = vector.broadcast %148 : vector<1x1x16xf32> to vector<2x8x16xf32>
    %150 = arith.addf %145, %149 : vector<2x8x16xf32>
    "tpu.trace_start"() <{level = 10 : i32, message = "bqd,bkd->bqk"}> : () -> ()
    %cst_54 = arith.constant dense<0.000000e+00> : vector<2x8x8xf32>
    %151 = tpu.matmul %134, %142, %cst_54 {dimension_numbers = #tpu.dot_dimension_numbers<[2], [2], [1], [1], [0, 0, 0, 1, 1, 1], [0], [0]>} : vector<2x8x16xf32>, vector<2x8x16xf32>, vector<2x8x8xf32> -> vector<2x8x8xf32>
    %cst_55 = arith.constant -1.000000e+09 : f32
    "tpu.trace_stop"() : () -> ()
    %152 = vector.shape_cast %26 : vector<1x8x8xi1> to vector<1x8x8xi1>
    %153 = vector.broadcast %152 : vector<1x8x8xi1> to vector<2x8x8xi1>
    %154 = vector.broadcast %cst_55 : f32 to vector<2x8x8xf32>
    %155 = arith.select %153, %151, %154 : vector<2x8x8xi1>, vector<2x8x8xf32>
    %cst_56 = arith.constant dense<0xFF800000> : vector<2x8xf32>
    %156 = vector.multi_reduction <maximumf>, %155, %cst_56 [2] : vector<2x8x8xf32> to vector<2x8xf32>
    %157 = vector.shape_cast %156 : vector<2x8xf32> to vector<2x8x1xf32>
    %158 = vector.broadcast %157 : vector<2x8x1xf32> to vector<2x8x8xf32>
    %159 = arith.subf %155, %158 : vector<2x8x8xf32>
    %160 = math.exp %159 : vector<2x8x8xf32>
    %cst_57 = arith.constant dense<0.000000e+00> : vector<2x8xf32>
    %161 = vector.multi_reduction <add>, %160, %cst_57 [2] : vector<2x8x8xf32> to vector<2x8xf32>
    %162 = vector.shape_cast %161 : vector<2x8xf32> to vector<2x8x1xf32>
    %163 = tpu.reciprocal %162 {approx = true} : vector<2x8x1xf32> -> vector<2x8x1xf32>
    %164 = vector.broadcast %163 : vector<2x8x1xf32> to vector<2x8x8xf32>
    %165 = arith.mulf %160, %164 : vector<2x8x8xf32>
    "tpu.trace_start"() <{level = 10 : i32, message = "bqk,bkd->bqd"}> : () -> ()
    %cst_58 = arith.constant dense<0.000000e+00> : vector<2x8x16xf32>
    %166 = tpu.matmul %165, %150, %cst_58 {dimension_numbers = #tpu.dot_dimension_numbers<[2], [1], [1], [2], [0, 0, 0, 1, 1, 2], [0], [0]>} : vector<2x8x8xf32>, vector<2x8x16xf32>, vector<2x8x16xf32> -> vector<2x8x16xf32>
    "tpu.trace_stop"() : () -> ()
    %167 = vector.extract_strided_slice %57 {offsets = [1, 0, 0], sizes = [1, 16, 32], strides = [1, 1, 1]} : vector<2x16x32xf32> to vector<1x16x32xf32>
    %168 = vector.shape_cast %167 : vector<1x16x32xf32> to vector<16x32xf32>
    "tpu.trace_start"() <{level = 10 : i32, message = "bsd,dh->bsh"}> : () -> ()
    %cst_59 = arith.constant dense<0.000000e+00> : vector<2x8x32xf32>
    %169 = tpu.matmul %166, %168, %cst_59 {dimension_numbers = #tpu.dot_dimension_numbers<[2], [0], [0, 1], [1], [0, 0, 0, 1, 1, 1], [], []>} : vector<2x8x16xf32>, vector<16x32xf32>, vector<2x8x32xf32> -> vector<2x8x32xf32>
    "tpu.trace_stop"() : () -> ()
    %170 = arith.addf %126, %169 : vector<2x8x32xf32>
    %171 = arith.addf %22, %170 : vector<2x8x32xf32>
    %172 = vector.shape_cast %34 : vector<1x32xf32> to vector<1x1x32xf32>
    %173 = vector.broadcast %172 : vector<1x1x32xf32> to vector<2x8x32xf32>
    %174 = arith.addf %171, %173 : vector<2x8x32xf32>
    %cst_60 = arith.constant dense<0.000000e+00> : vector<2x8xf32>
    %175 = vector.multi_reduction <add>, %174, %cst_60 [2] : vector<2x8x32xf32> to vector<2x8xf32>
    %176 = vector.shape_cast %175 : vector<2x8xf32> to vector<2x8x1xf32>
    %cst_61 = arith.constant 3.200000e+01 : f32
    %177 = vector.broadcast %cst_61 : f32 to vector<2x8x1xf32>
    %178 = arith.divf %176, %177 : vector<2x8x1xf32>
    %179 = vector.broadcast %178 : vector<2x8x1xf32> to vector<2x8x32xf32>
    %180 = arith.subf %174, %179 : vector<2x8x32xf32>
    %181 = arith.mulf %180, %180 : vector<2x8x32xf32>
    %cst_62 = arith.constant dense<0.000000e+00> : vector<2x8xf32>
    %182 = vector.multi_reduction <add>, %181, %cst_62 [2] : vector<2x8x32xf32> to vector<2x8xf32>
    %183 = vector.shape_cast %182 : vector<2x8xf32> to vector<2x8x1xf32>
    %cst_63 = arith.constant 3.200000e+01 : f32
    %184 = vector.broadcast %cst_63 : f32 to vector<2x8x1xf32>
    %185 = arith.divf %183, %184 : vector<2x8x1xf32>
    %186 = vector.broadcast %178 : vector<2x8x1xf32> to vector<2x8x32xf32>
    %187 = arith.subf %174, %186 : vector<2x8x32xf32>
    %cst_64 = arith.constant 9.99999974E-6 : f32
    %188 = vector.broadcast %cst_64 : f32 to vector<2x8x1xf32>
    %189 = arith.addf %185, %188 : vector<2x8x1xf32>
    %190 = math.rsqrt %189 : vector<2x8x1xf32>
    %191 = vector.broadcast %190 : vector<2x8x1xf32> to vector<2x8x32xf32>
    %192 = arith.mulf %187, %191 : vector<2x8x32xf32>
    %193 = vector.shape_cast %32 : vector<1x32xf32> to vector<1x1x32xf32>
    %194 = vector.broadcast %193 : vector<1x1x32xf32> to vector<2x8x32xf32>
    %195 = arith.mulf %192, %194 : vector<2x8x32xf32>
    %196 = vector.shape_cast %33 : vector<1x32xf32> to vector<1x1x32xf32>
    %197 = vector.broadcast %196 : vector<1x1x32xf32> to vector<2x8x32xf32>
    %198 = arith.addf %195, %197 : vector<2x8x32xf32>
    %199 = arith.index_cast %c0_i32 : i32 to index
    %c0_65 = arith.constant 0 : index
    %c0_66 = arith.constant 0 : index
    %200 = vector.load %arg15[%199, %c0_65, %c0_66] : memref<2x32x128xf32, #tpu.memory_space<vmem>>, vector<1x32x128xf32>
    %201 = vector.shape_cast %200 : vector<1x32x128xf32> to vector<32x128xf32>
    "tpu.trace_start"() <{level = 10 : i32, message = "bsh,hf->bsf"}> : () -> ()
    %cst_67 = arith.constant dense<0.000000e+00> : vector<2x8x128xf32>
    %202 = tpu.matmul %198, %201, %cst_67 {dimension_numbers = #tpu.dot_dimension_numbers<[2], [0], [0, 1], [1], [0, 0, 0, 1, 1, 1], [], []>} : vector<2x8x32xf32>, vector<32x128xf32>, vector<2x8x128xf32> -> vector<2x8x128xf32>
    "tpu.trace_stop"() : () -> ()
    %203 = vector.shape_cast %36 : vector<1x128xf32> to vector<1x1x128xf32>
    %204 = vector.broadcast %203 : vector<1x1x128xf32> to vector<2x8x128xf32>
    %205 = arith.addf %202, %204 : vector<2x8x128xf32>
    %cst_68 = arith.constant 5.000000e-01 : f32
    %206 = vector.broadcast %cst_68 : f32 to vector<2x8x128xf32>
    %207 = arith.mulf %206, %205 : vector<2x8x128xf32>
    %cst_69 = arith.constant 4.471500e-02 : f32
    %208 = vector.broadcast %cst_69 : f32 to vector<2x8x128xf32>
    %209 = arith.mulf %208, %205 : vector<2x8x128xf32>
    %210 = arith.mulf %209, %205 : vector<2x8x128xf32>
    %211 = arith.mulf %210, %205 : vector<2x8x128xf32>
    %212 = arith.addf %205, %211 : vector<2x8x128xf32>
    %cst_70 = arith.constant 0.797884583 : f32
    %213 = vector.broadcast %cst_70 : f32 to vector<2x8x128xf32>
    %214 = arith.mulf %213, %212 : vector<2x8x128xf32>
    %215 = math.tanh %214 : vector<2x8x128xf32>
    %cst_71 = arith.constant 1.000000e+00 : f32
    %216 = vector.broadcast %cst_71 : f32 to vector<2x8x128xf32>
    %217 = arith.addf %216, %215 : vector<2x8x128xf32>
    %218 = arith.mulf %207, %217 : vector<2x8x128xf32>
    %219 = arith.index_cast %c0_i32 : i32 to index
    %c0_72 = arith.constant 0 : index
    %c0_73 = arith.constant 0 : index
    %220 = vector.load %arg16[%219, %c0_72, %c0_73] : memref<2x128x32xf32, #tpu.memory_space<vmem>>, vector<1x128x32xf32>
    %221 = vector.shape_cast %220 : vector<1x128x32xf32> to vector<128x32xf32>
    "tpu.trace_start"() <{level = 10 : i32, message = "bsf,fh->bsh"}> : () -> ()
    %cst_74 = arith.constant dense<0.000000e+00> : vector<2x8x32xf32>
    %222 = tpu.matmul %218, %221, %cst_74 {dimension_numbers = #tpu.dot_dimension_numbers<[2], [0], [0, 1], [1], [0, 0, 0, 1, 1, 1], [], []>} : vector<2x8x128xf32>, vector<128x32xf32>, vector<2x8x32xf32> -> vector<2x8x32xf32>
    "tpu.trace_stop"() : () -> ()
    %223 = arith.addf %174, %222 : vector<2x8x32xf32>
    %224 = vector.shape_cast %35 : vector<1x32xf32> to vector<1x1x32xf32>
    %225 = vector.broadcast %224 : vector<1x1x32xf32> to vector<2x8x32xf32>
    %226 = arith.addf %223, %225 : vector<2x8x32xf32>
    %c1_i32 = arith.constant 1 : i32
    %227 = arith.index_cast %c1_i32 : i32 to index
    %c0_75 = arith.constant 0 : index
    %c0_76 = arith.constant 0 : index
    %228 = vector.load %arg7[%227, %c0_75, %c0_76] : memref<2x8x128xf32, #tpu.memory_space<vmem>>, vector<1x8x128xf32>
    %229 = vector.shape_cast %228 : vector<1x8x128xf32> to vector<8x128xf32>
    %230 = vector.extract_strided_slice %229 {offsets = [0, 0], sizes = [1, 32], strides = [1, 1]} : vector<8x128xf32> to vector<1x32xf32>
    %231 = vector.extract_strided_slice %229 {offsets = [1, 0], sizes = [1, 32], strides = [1, 1]} : vector<8x128xf32> to vector<1x32xf32>
    %232 = vector.extract_strided_slice %229 {offsets = [2, 0], sizes = [1, 32], strides = [1, 1]} : vector<8x128xf32> to vector<1x32xf32>
    %233 = vector.extract_strided_slice %229 {offsets = [3, 0], sizes = [1, 32], strides = [1, 1]} : vector<8x128xf32> to vector<1x32xf32>
    %234 = vector.extract_strided_slice %229 {offsets = [4, 0], sizes = [1, 32], strides = [1, 1]} : vector<8x128xf32> to vector<1x32xf32>
    %235 = vector.extract_strided_slice %229 {offsets = [5, 0], sizes = [1, 32], strides = [1, 1]} : vector<8x128xf32> to vector<1x32xf32>
    %236 = vector.extract_strided_slice %229 {offsets = [6, 0], sizes = [1, 128], strides = [1, 1]} : vector<8x128xf32> to vector<1x128xf32>
    %237 = arith.index_cast %c1_i32 : i32 to index
    %c0_77 = arith.constant 0 : index
    %c0_78 = arith.constant 0 : index
    %c0_79 = arith.constant 0 : index
    %238 = vector.load %arg8[%237, %c0_77, %c0_78, %c0_79] : memref<2x2x32x16xf32, #tpu.memory_space<vmem>>, vector<1x2x32x16xf32>
    %239 = vector.shape_cast %238 : vector<1x2x32x16xf32> to vector<2x32x16xf32>
    %240 = arith.index_cast %c1_i32 : i32 to index
    %c0_80 = arith.constant 0 : index
    %c0_81 = arith.constant 0 : index
    %c0_82 = arith.constant 0 : index
    %241 = vector.load %arg9[%240, %c0_80, %c0_81, %c0_82] : memref<2x2x32x16xf32, #tpu.memory_space<vmem>>, vector<1x2x32x16xf32>
    %242 = vector.shape_cast %241 : vector<1x2x32x16xf32> to vector<2x32x16xf32>
    %243 = arith.index_cast %c1_i32 : i32 to index
    %c0_83 = arith.constant 0 : index
    %c0_84 = arith.constant 0 : index
    %c0_85 = arith.constant 0 : index
    %244 = vector.load %arg10[%243, %c0_83, %c0_84, %c0_85] : memref<2x2x32x16xf32, #tpu.memory_space<vmem>>, vector<1x2x32x16xf32>
    %245 = vector.shape_cast %244 : vector<1x2x32x16xf32> to vector<2x32x16xf32>
    %246 = arith.index_cast %c1_i32 : i32 to index
    %c0_86 = arith.constant 0 : index
    %c0_87 = arith.constant 0 : index
    %c0_88 = arith.constant 0 : index
    %247 = vector.load %arg11[%246, %c0_86, %c0_87, %c0_88] : memref<2x2x1x16xf32, #tpu.memory_space<vmem>>, vector<1x2x1x16xf32>
    %248 = vector.shape_cast %247 : vector<1x2x1x16xf32> to vector<2x1x16xf32>
    %249 = arith.index_cast %c1_i32 : i32 to index
    %c0_89 = arith.constant 0 : index
    %c0_90 = arith.constant 0 : index
    %c0_91 = arith.constant 0 : index
    %250 = vector.load %arg12[%249, %c0_89, %c0_90, %c0_91] : memref<2x2x1x16xf32, #tpu.memory_space<vmem>>, vector<1x2x1x16xf32>
    %251 = vector.shape_cast %250 : vector<1x2x1x16xf32> to vector<2x1x16xf32>
    %252 = arith.index_cast %c1_i32 : i32 to index
    %c0_92 = arith.constant 0 : index
    %c0_93 = arith.constant 0 : index
    %c0_94 = arith.constant 0 : index
    %253 = vector.load %arg13[%252, %c0_92, %c0_93, %c0_94] : memref<2x2x1x16xf32, #tpu.memory_space<vmem>>, vector<1x2x1x16xf32>
    %254 = vector.shape_cast %253 : vector<1x2x1x16xf32> to vector<2x1x16xf32>
    %255 = arith.index_cast %c1_i32 : i32 to index
    %c0_95 = arith.constant 0 : index
    %c0_96 = arith.constant 0 : index
    %c0_97 = arith.constant 0 : index
    %256 = vector.load %arg14[%255, %c0_95, %c0_96, %c0_97] : memref<2x2x16x32xf32, #tpu.memory_space<vmem>>, vector<1x2x16x32xf32>
    %257 = vector.shape_cast %256 : vector<1x2x16x32xf32> to vector<2x16x32xf32>
    %cst_98 = arith.constant dense<0.000000e+00> : vector<2x8xf32>
    %258 = vector.multi_reduction <add>, %226, %cst_98 [2] : vector<2x8x32xf32> to vector<2x8xf32>
    %259 = vector.shape_cast %258 : vector<2x8xf32> to vector<2x8x1xf32>
    %cst_99 = arith.constant 3.200000e+01 : f32
    %260 = vector.broadcast %cst_99 : f32 to vector<2x8x1xf32>
    %261 = arith.divf %259, %260 : vector<2x8x1xf32>
    %262 = vector.broadcast %261 : vector<2x8x1xf32> to vector<2x8x32xf32>
    %263 = arith.subf %226, %262 : vector<2x8x32xf32>
    %264 = arith.mulf %263, %263 : vector<2x8x32xf32>
    %cst_100 = arith.constant dense<0.000000e+00> : vector<2x8xf32>
    %265 = vector.multi_reduction <add>, %264, %cst_100 [2] : vector<2x8x32xf32> to vector<2x8xf32>
    %266 = vector.shape_cast %265 : vector<2x8xf32> to vector<2x8x1xf32>
    %cst_101 = arith.constant 3.200000e+01 : f32
    %267 = vector.broadcast %cst_101 : f32 to vector<2x8x1xf32>
    %268 = arith.divf %266, %267 : vector<2x8x1xf32>
    %269 = vector.broadcast %261 : vector<2x8x1xf32> to vector<2x8x32xf32>
    %270 = arith.subf %226, %269 : vector<2x8x32xf32>
    %cst_102 = arith.constant 9.99999974E-6 : f32
    %271 = vector.broadcast %cst_102 : f32 to vector<2x8x1xf32>
    %272 = arith.addf %268, %271 : vector<2x8x1xf32>
    %273 = math.rsqrt %272 : vector<2x8x1xf32>
    %274 = vector.broadcast %273 : vector<2x8x1xf32> to vector<2x8x32xf32>
    %275 = arith.mulf %270, %274 : vector<2x8x32xf32>
    %276 = vector.shape_cast %230 : vector<1x32xf32> to vector<1x1x32xf32>
    %277 = vector.broadcast %276 : vector<1x1x32xf32> to vector<2x8x32xf32>
    %278 = arith.mulf %275, %277 : vector<2x8x32xf32>
    %279 = vector.shape_cast %231 : vector<1x32xf32> to vector<1x1x32xf32>
    %280 = vector.broadcast %279 : vector<1x1x32xf32> to vector<2x8x32xf32>
    %281 = arith.addf %278, %280 : vector<2x8x32xf32>
    %cst_103 = arith.constant 0.000000e+00 : f32
    %282 = vector.broadcast %cst_103 : f32 to vector<2x8x32xf32>
    %283 = vector.extract_strided_slice %239 {offsets = [0, 0, 0], sizes = [1, 32, 16], strides = [1, 1, 1]} : vector<2x32x16xf32> to vector<1x32x16xf32>
    %284 = vector.shape_cast %283 : vector<1x32x16xf32> to vector<32x16xf32>
    "tpu.trace_start"() <{level = 10 : i32, message = "bsh,hd->bsd"}> : () -> ()
    %cst_104 = arith.constant dense<0.000000e+00> : vector<2x8x16xf32>
    %285 = tpu.matmul %281, %284, %cst_104 {dimension_numbers = #tpu.dot_dimension_numbers<[2], [0], [0, 1], [1], [0, 0, 0, 1, 1, 1], [], []>} : vector<2x8x32xf32>, vector<32x16xf32>, vector<2x8x16xf32> -> vector<2x8x16xf32>
    "tpu.trace_stop"() : () -> ()
    %286 = vector.extract_strided_slice %248 {offsets = [0, 0, 0], sizes = [1, 1, 16], strides = [1, 1, 1]} : vector<2x1x16xf32> to vector<1x1x16xf32>
    %287 = vector.shape_cast %286 : vector<1x1x16xf32> to vector<1x16xf32>
    %288 = vector.shape_cast %287 : vector<1x16xf32> to vector<1x1x16xf32>
    %289 = vector.broadcast %288 : vector<1x1x16xf32> to vector<2x8x16xf32>
    %290 = arith.addf %285, %289 : vector<2x8x16xf32>
    %291 = vector.extract_strided_slice %242 {offsets = [0, 0, 0], sizes = [1, 32, 16], strides = [1, 1, 1]} : vector<2x32x16xf32> to vector<1x32x16xf32>
    %292 = vector.shape_cast %291 : vector<1x32x16xf32> to vector<32x16xf32>
    "tpu.trace_start"() <{level = 10 : i32, message = "bsh,hd->bsd"}> : () -> ()
    %cst_105 = arith.constant dense<0.000000e+00> : vector<2x8x16xf32>
    %293 = tpu.matmul %281, %292, %cst_105 {dimension_numbers = #tpu.dot_dimension_numbers<[2], [0], [0, 1], [1], [0, 0, 0, 1, 1, 1], [], []>} : vector<2x8x32xf32>, vector<32x16xf32>, vector<2x8x16xf32> -> vector<2x8x16xf32>
    "tpu.trace_stop"() : () -> ()
    %294 = vector.extract_strided_slice %251 {offsets = [0, 0, 0], sizes = [1, 1, 16], strides = [1, 1, 1]} : vector<2x1x16xf32> to vector<1x1x16xf32>
    %295 = vector.shape_cast %294 : vector<1x1x16xf32> to vector<1x16xf32>
    %296 = vector.shape_cast %295 : vector<1x16xf32> to vector<1x1x16xf32>
    %297 = vector.broadcast %296 : vector<1x1x16xf32> to vector<2x8x16xf32>
    %298 = arith.addf %293, %297 : vector<2x8x16xf32>
    %299 = vector.extract_strided_slice %245 {offsets = [0, 0, 0], sizes = [1, 32, 16], strides = [1, 1, 1]} : vector<2x32x16xf32> to vector<1x32x16xf32>
    %300 = vector.shape_cast %299 : vector<1x32x16xf32> to vector<32x16xf32>
    "tpu.trace_start"() <{level = 10 : i32, message = "bsh,hd->bsd"}> : () -> ()
    %cst_106 = arith.constant dense<0.000000e+00> : vector<2x8x16xf32>
    %301 = tpu.matmul %281, %300, %cst_106 {dimension_numbers = #tpu.dot_dimension_numbers<[2], [0], [0, 1], [1], [0, 0, 0, 1, 1, 1], [], []>} : vector<2x8x32xf32>, vector<32x16xf32>, vector<2x8x16xf32> -> vector<2x8x16xf32>
    "tpu.trace_stop"() : () -> ()
    %302 = vector.extract_strided_slice %254 {offsets = [0, 0, 0], sizes = [1, 1, 16], strides = [1, 1, 1]} : vector<2x1x16xf32> to vector<1x1x16xf32>
    %303 = vector.shape_cast %302 : vector<1x1x16xf32> to vector<1x16xf32>
    %304 = vector.shape_cast %303 : vector<1x16xf32> to vector<1x1x16xf32>
    %305 = vector.broadcast %304 : vector<1x1x16xf32> to vector<2x8x16xf32>
    %306 = arith.addf %301, %305 : vector<2x8x16xf32>
    "tpu.trace_start"() <{level = 10 : i32, message = "bqd,bkd->bqk"}> : () -> ()
    %cst_107 = arith.constant dense<0.000000e+00> : vector<2x8x8xf32>
    %307 = tpu.matmul %290, %298, %cst_107 {dimension_numbers = #tpu.dot_dimension_numbers<[2], [2], [1], [1], [0, 0, 0, 1, 1, 1], [0], [0]>} : vector<2x8x16xf32>, vector<2x8x16xf32>, vector<2x8x8xf32> -> vector<2x8x8xf32>
    %cst_108 = arith.constant -1.000000e+09 : f32
    "tpu.trace_stop"() : () -> ()
    %308 = vector.shape_cast %26 : vector<1x8x8xi1> to vector<1x8x8xi1>
    %309 = vector.broadcast %308 : vector<1x8x8xi1> to vector<2x8x8xi1>
    %310 = vector.broadcast %cst_108 : f32 to vector<2x8x8xf32>
    %311 = arith.select %309, %307, %310 : vector<2x8x8xi1>, vector<2x8x8xf32>
    %cst_109 = arith.constant dense<0xFF800000> : vector<2x8xf32>
    %312 = vector.multi_reduction <maximumf>, %311, %cst_109 [2] : vector<2x8x8xf32> to vector<2x8xf32>
    %313 = vector.shape_cast %312 : vector<2x8xf32> to vector<2x8x1xf32>
    %314 = vector.broadcast %313 : vector<2x8x1xf32> to vector<2x8x8xf32>
    %315 = arith.subf %311, %314 : vector<2x8x8xf32>
    %316 = math.exp %315 : vector<2x8x8xf32>
    %cst_110 = arith.constant dense<0.000000e+00> : vector<2x8xf32>
    %317 = vector.multi_reduction <add>, %316, %cst_110 [2] : vector<2x8x8xf32> to vector<2x8xf32>
    %318 = vector.shape_cast %317 : vector<2x8xf32> to vector<2x8x1xf32>
    %319 = tpu.reciprocal %318 {approx = true} : vector<2x8x1xf32> -> vector<2x8x1xf32>
    %320 = vector.broadcast %319 : vector<2x8x1xf32> to vector<2x8x8xf32>
    %321 = arith.mulf %316, %320 : vector<2x8x8xf32>
    "tpu.trace_start"() <{level = 10 : i32, message = "bqk,bkd->bqd"}> : () -> ()
    %cst_111 = arith.constant dense<0.000000e+00> : vector<2x8x16xf32>
    %322 = tpu.matmul %321, %306, %cst_111 {dimension_numbers = #tpu.dot_dimension_numbers<[2], [1], [1], [2], [0, 0, 0, 1, 1, 2], [0], [0]>} : vector<2x8x8xf32>, vector<2x8x16xf32>, vector<2x8x16xf32> -> vector<2x8x16xf32>
    "tpu.trace_stop"() : () -> ()
    %323 = vector.extract_strided_slice %257 {offsets = [0, 0, 0], sizes = [1, 16, 32], strides = [1, 1, 1]} : vector<2x16x32xf32> to vector<1x16x32xf32>
    %324 = vector.shape_cast %323 : vector<1x16x32xf32> to vector<16x32xf32>
    "tpu.trace_start"() <{level = 10 : i32, message = "bsd,dh->bsh"}> : () -> ()
    %cst_112 = arith.constant dense<0.000000e+00> : vector<2x8x32xf32>
    %325 = tpu.matmul %322, %324, %cst_112 {dimension_numbers = #tpu.dot_dimension_numbers<[2], [0], [0, 1], [1], [0, 0, 0, 1, 1, 1], [], []>} : vector<2x8x16xf32>, vector<16x32xf32>, vector<2x8x32xf32> -> vector<2x8x32xf32>
    "tpu.trace_stop"() : () -> ()
    %326 = arith.addf %282, %325 : vector<2x8x32xf32>
    %327 = vector.extract_strided_slice %239 {offsets = [1, 0, 0], sizes = [1, 32, 16], strides = [1, 1, 1]} : vector<2x32x16xf32> to vector<1x32x16xf32>
    %328 = vector.shape_cast %327 : vector<1x32x16xf32> to vector<32x16xf32>
    "tpu.trace_start"() <{level = 10 : i32, message = "bsh,hd->bsd"}> : () -> ()
    %cst_113 = arith.constant dense<0.000000e+00> : vector<2x8x16xf32>
    %329 = tpu.matmul %281, %328, %cst_113 {dimension_numbers = #tpu.dot_dimension_numbers<[2], [0], [0, 1], [1], [0, 0, 0, 1, 1, 1], [], []>} : vector<2x8x32xf32>, vector<32x16xf32>, vector<2x8x16xf32> -> vector<2x8x16xf32>
    "tpu.trace_stop"() : () -> ()
    %330 = vector.extract_strided_slice %248 {offsets = [1, 0, 0], sizes = [1, 1, 16], strides = [1, 1, 1]} : vector<2x1x16xf32> to vector<1x1x16xf32>
    %331 = vector.shape_cast %330 : vector<1x1x16xf32> to vector<1x16xf32>
    %332 = vector.shape_cast %331 : vector<1x16xf32> to vector<1x1x16xf32>
    %333 = vector.broadcast %332 : vector<1x1x16xf32> to vector<2x8x16xf32>
    %334 = arith.addf %329, %333 : vector<2x8x16xf32>
    %335 = vector.extract_strided_slice %242 {offsets = [1, 0, 0], sizes = [1, 32, 16], strides = [1, 1, 1]} : vector<2x32x16xf32> to vector<1x32x16xf32>
    %336 = vector.shape_cast %335 : vector<1x32x16xf32> to vector<32x16xf32>
    "tpu.trace_start"() <{level = 10 : i32, message = "bsh,hd->bsd"}> : () -> ()
    %cst_114 = arith.constant dense<0.000000e+00> : vector<2x8x16xf32>
    %337 = tpu.matmul %281, %336, %cst_114 {dimension_numbers = #tpu.dot_dimension_numbers<[2], [0], [0, 1], [1], [0, 0, 0, 1, 1, 1], [], []>} : vector<2x8x32xf32>, vector<32x16xf32>, vector<2x8x16xf32> -> vector<2x8x16xf32>
    "tpu.trace_stop"() : () -> ()
    %338 = vector.extract_strided_slice %251 {offsets = [1, 0, 0], sizes = [1, 1, 16], strides = [1, 1, 1]} : vector<2x1x16xf32> to vector<1x1x16xf32>
    %339 = vector.shape_cast %338 : vector<1x1x16xf32> to vector<1x16xf32>
    %340 = vector.shape_cast %339 : vector<1x16xf32> to vector<1x1x16xf32>
    %341 = vector.broadcast %340 : vector<1x1x16xf32> to vector<2x8x16xf32>
    %342 = arith.addf %337, %341 : vector<2x8x16xf32>
    %343 = vector.extract_strided_slice %245 {offsets = [1, 0, 0], sizes = [1, 32, 16], strides = [1, 1, 1]} : vector<2x32x16xf32> to vector<1x32x16xf32>
    %344 = vector.shape_cast %343 : vector<1x32x16xf32> to vector<32x16xf32>
    "tpu.trace_start"() <{level = 10 : i32, message = "bsh,hd->bsd"}> : () -> ()
    %cst_115 = arith.constant dense<0.000000e+00> : vector<2x8x16xf32>
    %345 = tpu.matmul %281, %344, %cst_115 {dimension_numbers = #tpu.dot_dimension_numbers<[2], [0], [0, 1], [1], [0, 0, 0, 1, 1, 1], [], []>} : vector<2x8x32xf32>, vector<32x16xf32>, vector<2x8x16xf32> -> vector<2x8x16xf32>
    "tpu.trace_stop"() : () -> ()
    %346 = vector.extract_strided_slice %254 {offsets = [1, 0, 0], sizes = [1, 1, 16], strides = [1, 1, 1]} : vector<2x1x16xf32> to vector<1x1x16xf32>
    %347 = vector.shape_cast %346 : vector<1x1x16xf32> to vector<1x16xf32>
    %348 = vector.shape_cast %347 : vector<1x16xf32> to vector<1x1x16xf32>
    %349 = vector.broadcast %348 : vector<1x1x16xf32> to vector<2x8x16xf32>
    %350 = arith.addf %345, %349 : vector<2x8x16xf32>
    "tpu.trace_start"() <{level = 10 : i32, message = "bqd,bkd->bqk"}> : () -> ()
    %cst_116 = arith.constant dense<0.000000e+00> : vector<2x8x8xf32>
    %351 = tpu.matmul %334, %342, %cst_116 {dimension_numbers = #tpu.dot_dimension_numbers<[2], [2], [1], [1], [0, 0, 0, 1, 1, 1], [0], [0]>} : vector<2x8x16xf32>, vector<2x8x16xf32>, vector<2x8x8xf32> -> vector<2x8x8xf32>
    %cst_117 = arith.constant -1.000000e+09 : f32
    "tpu.trace_stop"() : () -> ()
    %352 = vector.shape_cast %26 : vector<1x8x8xi1> to vector<1x8x8xi1>
    %353 = vector.broadcast %352 : vector<1x8x8xi1> to vector<2x8x8xi1>
    %354 = vector.broadcast %cst_117 : f32 to vector<2x8x8xf32>
    %355 = arith.select %353, %351, %354 : vector<2x8x8xi1>, vector<2x8x8xf32>
    %cst_118 = arith.constant dense<0xFF800000> : vector<2x8xf32>
    %356 = vector.multi_reduction <maximumf>, %355, %cst_118 [2] : vector<2x8x8xf32> to vector<2x8xf32>
    %357 = vector.shape_cast %356 : vector<2x8xf32> to vector<2x8x1xf32>
    %358 = vector.broadcast %357 : vector<2x8x1xf32> to vector<2x8x8xf32>
    %359 = arith.subf %355, %358 : vector<2x8x8xf32>
    %360 = math.exp %359 : vector<2x8x8xf32>
    %cst_119 = arith.constant dense<0.000000e+00> : vector<2x8xf32>
    %361 = vector.multi_reduction <add>, %360, %cst_119 [2] : vector<2x8x8xf32> to vector<2x8xf32>
    %362 = vector.shape_cast %361 : vector<2x8xf32> to vector<2x8x1xf32>
    %363 = tpu.reciprocal %362 {approx = true} : vector<2x8x1xf32> -> vector<2x8x1xf32>
    %364 = vector.broadcast %363 : vector<2x8x1xf32> to vector<2x8x8xf32>
    %365 = arith.mulf %360, %364 : vector<2x8x8xf32>
    "tpu.trace_start"() <{level = 10 : i32, message = "bqk,bkd->bqd"}> : () -> ()
    %cst_120 = arith.constant dense<0.000000e+00> : vector<2x8x16xf32>
    %366 = tpu.matmul %365, %350, %cst_120 {dimension_numbers = #tpu.dot_dimension_numbers<[2], [1], [1], [2], [0, 0, 0, 1, 1, 2], [0], [0]>} : vector<2x8x8xf32>, vector<2x8x16xf32>, vector<2x8x16xf32> -> vector<2x8x16xf32>
    "tpu.trace_stop"() : () -> ()
    %367 = vector.extract_strided_slice %257 {offsets = [1, 0, 0], sizes = [1, 16, 32], strides = [1, 1, 1]} : vector<2x16x32xf32> to vector<1x16x32xf32>
    %368 = vector.shape_cast %367 : vector<1x16x32xf32> to vector<16x32xf32>
    "tpu.trace_start"() <{level = 10 : i32, message = "bsd,dh->bsh"}> : () -> ()
    %cst_121 = arith.constant dense<0.000000e+00> : vector<2x8x32xf32>
    %369 = tpu.matmul %366, %368, %cst_121 {dimension_numbers = #tpu.dot_dimension_numbers<[2], [0], [0, 1], [1], [0, 0, 0, 1, 1, 1], [], []>} : vector<2x8x16xf32>, vector<16x32xf32>, vector<2x8x32xf32> -> vector<2x8x32xf32>
    "tpu.trace_stop"() : () -> ()
    %370 = arith.addf %326, %369 : vector<2x8x32xf32>
    %371 = arith.addf %226, %370 : vector<2x8x32xf32>
    %372 = vector.shape_cast %234 : vector<1x32xf32> to vector<1x1x32xf32>
    %373 = vector.broadcast %372 : vector<1x1x32xf32> to vector<2x8x32xf32>
    %374 = arith.addf %371, %373 : vector<2x8x32xf32>
    %cst_122 = arith.constant dense<0.000000e+00> : vector<2x8xf32>
    %375 = vector.multi_reduction <add>, %374, %cst_122 [2] : vector<2x8x32xf32> to vector<2x8xf32>
    %376 = vector.shape_cast %375 : vector<2x8xf32> to vector<2x8x1xf32>
    %cst_123 = arith.constant 3.200000e+01 : f32
    %377 = vector.broadcast %cst_123 : f32 to vector<2x8x1xf32>
    %378 = arith.divf %376, %377 : vector<2x8x1xf32>
    %379 = vector.broadcast %378 : vector<2x8x1xf32> to vector<2x8x32xf32>
    %380 = arith.subf %374, %379 : vector<2x8x32xf32>
    %381 = arith.mulf %380, %380 : vector<2x8x32xf32>
    %cst_124 = arith.constant dense<0.000000e+00> : vector<2x8xf32>
    %382 = vector.multi_reduction <add>, %381, %cst_124 [2] : vector<2x8x32xf32> to vector<2x8xf32>
    %383 = vector.shape_cast %382 : vector<2x8xf32> to vector<2x8x1xf32>
    %cst_125 = arith.constant 3.200000e+01 : f32
    %384 = vector.broadcast %cst_125 : f32 to vector<2x8x1xf32>
    %385 = arith.divf %383, %384 : vector<2x8x1xf32>
    %386 = vector.broadcast %378 : vector<2x8x1xf32> to vector<2x8x32xf32>
    %387 = arith.subf %374, %386 : vector<2x8x32xf32>
    %cst_126 = arith.constant 9.99999974E-6 : f32
    %388 = vector.broadcast %cst_126 : f32 to vector<2x8x1xf32>
    %389 = arith.addf %385, %388 : vector<2x8x1xf32>
    %390 = math.rsqrt %389 : vector<2x8x1xf32>
    %391 = vector.broadcast %390 : vector<2x8x1xf32> to vector<2x8x32xf32>
    %392 = arith.mulf %387, %391 : vector<2x8x32xf32>
    %393 = vector.shape_cast %232 : vector<1x32xf32> to vector<1x1x32xf32>
    %394 = vector.broadcast %393 : vector<1x1x32xf32> to vector<2x8x32xf32>
    %395 = arith.mulf %392, %394 : vector<2x8x32xf32>
    %396 = vector.shape_cast %233 : vector<1x32xf32> to vector<1x1x32xf32>
    %397 = vector.broadcast %396 : vector<1x1x32xf32> to vector<2x8x32xf32>
    %398 = arith.addf %395, %397 : vector<2x8x32xf32>
    %399 = arith.index_cast %c1_i32 : i32 to index
    %c0_127 = arith.constant 0 : index
    %c0_128 = arith.constant 0 : index
    %400 = vector.load %arg15[%399, %c0_127, %c0_128] : memref<2x32x128xf32, #tpu.memory_space<vmem>>, vector<1x32x128xf32>
    %401 = vector.shape_cast %400 : vector<1x32x128xf32> to vector<32x128xf32>
    "tpu.trace_start"() <{level = 10 : i32, message = "bsh,hf->bsf"}> : () -> ()
    %cst_129 = arith.constant dense<0.000000e+00> : vector<2x8x128xf32>
    %402 = tpu.matmul %398, %401, %cst_129 {dimension_numbers = #tpu.dot_dimension_numbers<[2], [0], [0, 1], [1], [0, 0, 0, 1, 1, 1], [], []>} : vector<2x8x32xf32>, vector<32x128xf32>, vector<2x8x128xf32> -> vector<2x8x128xf32>
    "tpu.trace_stop"() : () -> ()
    %403 = vector.shape_cast %236 : vector<1x128xf32> to vector<1x1x128xf32>
    %404 = vector.broadcast %403 : vector<1x1x128xf32> to vector<2x8x128xf32>
    %405 = arith.addf %402, %404 : vector<2x8x128xf32>
    %cst_130 = arith.constant 5.000000e-01 : f32
    %406 = vector.broadcast %cst_130 : f32 to vector<2x8x128xf32>
    %407 = arith.mulf %406, %405 : vector<2x8x128xf32>
    %cst_131 = arith.constant 4.471500e-02 : f32
    %408 = vector.broadcast %cst_131 : f32 to vector<2x8x128xf32>
    %409 = arith.mulf %408, %405 : vector<2x8x128xf32>
    %410 = arith.mulf %409, %405 : vector<2x8x128xf32>
    %411 = arith.mulf %410, %405 : vector<2x8x128xf32>
    %412 = arith.addf %405, %411 : vector<2x8x128xf32>
    %cst_132 = arith.constant 0.797884583 : f32
    %413 = vector.broadcast %cst_132 : f32 to vector<2x8x128xf32>
    %414 = arith.mulf %413, %412 : vector<2x8x128xf32>
    %415 = math.tanh %414 : vector<2x8x128xf32>
    %cst_133 = arith.constant 1.000000e+00 : f32
    %416 = vector.broadcast %cst_133 : f32 to vector<2x8x128xf32>
    %417 = arith.addf %416, %415 : vector<2x8x128xf32>
    %418 = arith.mulf %407, %417 : vector<2x8x128xf32>
    %419 = arith.index_cast %c1_i32 : i32 to index
    %c0_134 = arith.constant 0 : index
    %c0_135 = arith.constant 0 : index
    %420 = vector.load %arg16[%419, %c0_134, %c0_135] : memref<2x128x32xf32, #tpu.memory_space<vmem>>, vector<1x128x32xf32>
    %421 = vector.shape_cast %420 : vector<1x128x32xf32> to vector<128x32xf32>
    "tpu.trace_start"() <{level = 10 : i32, message = "bsf,fh->bsh"}> : () -> ()
    %cst_136 = arith.constant dense<0.000000e+00> : vector<2x8x32xf32>
    %422 = tpu.matmul %418, %421, %cst_136 {dimension_numbers = #tpu.dot_dimension_numbers<[2], [0], [0, 1], [1], [0, 0, 0, 1, 1, 1], [], []>} : vector<2x8x128xf32>, vector<128x32xf32>, vector<2x8x32xf32> -> vector<2x8x32xf32>
    "tpu.trace_stop"() : () -> ()
    %423 = arith.addf %374, %422 : vector<2x8x32xf32>
    %424 = vector.shape_cast %235 : vector<1x32xf32> to vector<1x1x32xf32>
    %425 = vector.broadcast %424 : vector<1x1x32xf32> to vector<2x8x32xf32>
    %426 = arith.addf %423, %425 : vector<2x8x32xf32>
    %c2_i32 = arith.constant 2 : i32
    %c0_137 = arith.constant 0 : index
    %c0_138 = arith.constant 0 : index
    %427 = vector.load %arg6[%c0_137, %c0_138] : memref<2x32xf32, #tpu.memory_space<vmem>>, vector<1x32xf32>
    %c1 = arith.constant 1 : index
    %c0_139 = arith.constant 0 : index
    %428 = vector.load %arg6[%c1, %c0_139] : memref<2x32xf32, #tpu.memory_space<vmem>>, vector<1x32xf32>
    %cst_140 = arith.constant dense<0.000000e+00> : vector<2x8xf32>
    %429 = vector.multi_reduction <add>, %426, %cst_140 [2] : vector<2x8x32xf32> to vector<2x8xf32>
    %430 = vector.shape_cast %429 : vector<2x8xf32> to vector<2x8x1xf32>
    %cst_141 = arith.constant 3.200000e+01 : f32
    %431 = vector.broadcast %cst_141 : f32 to vector<2x8x1xf32>
    %432 = arith.divf %430, %431 : vector<2x8x1xf32>
    %433 = vector.broadcast %432 : vector<2x8x1xf32> to vector<2x8x32xf32>
    %434 = arith.subf %426, %433 : vector<2x8x32xf32>
    %435 = arith.mulf %434, %434 : vector<2x8x32xf32>
    %cst_142 = arith.constant dense<0.000000e+00> : vector<2x8xf32>
    %436 = vector.multi_reduction <add>, %435, %cst_142 [2] : vector<2x8x32xf32> to vector<2x8xf32>
    %437 = vector.shape_cast %436 : vector<2x8xf32> to vector<2x8x1xf32>
    %cst_143 = arith.constant 3.200000e+01 : f32
    %438 = vector.broadcast %cst_143 : f32 to vector<2x8x1xf32>
    %439 = arith.divf %437, %438 : vector<2x8x1xf32>
    %440 = vector.broadcast %432 : vector<2x8x1xf32> to vector<2x8x32xf32>
    %441 = arith.subf %426, %440 : vector<2x8x32xf32>
    %cst_144 = arith.constant 9.99999974E-6 : f32
    %442 = vector.broadcast %cst_144 : f32 to vector<2x8x1xf32>
    %443 = arith.addf %439, %442 : vector<2x8x1xf32>
    %444 = math.rsqrt %443 : vector<2x8x1xf32>
    %445 = vector.broadcast %444 : vector<2x8x1xf32> to vector<2x8x32xf32>
    %446 = arith.mulf %441, %445 : vector<2x8x32xf32>
    %447 = vector.shape_cast %427 : vector<1x32xf32> to vector<1x1x32xf32>
    %448 = vector.broadcast %447 : vector<1x1x32xf32> to vector<2x8x32xf32>
    %449 = arith.mulf %446, %448 : vector<2x8x32xf32>
    %450 = vector.shape_cast %428 : vector<1x32xf32> to vector<1x1x32xf32>
    %451 = vector.broadcast %450 : vector<1x1x32xf32> to vector<2x8x32xf32>
    %452 = arith.addf %449, %451 : vector<2x8x32xf32>
    %c0_145 = arith.constant 0 : index
    %c0_146 = arith.constant 0 : index
    %453 = vector.load %arg5[%c0_145, %c0_146] : memref<128x32xf32, #tpu.memory_space<vmem>>, vector<128x32xf32>
    "tpu.trace_start"() <{level = 10 : i32, message = "bsh,vh->bsv"}> : () -> ()
    %cst_147 = arith.constant dense<0.000000e+00> : vector<2x8x128xf32>
    %454 = tpu.matmul %452, %453, %cst_147 {dimension_numbers = #tpu.dot_dimension_numbers<[2], [1], [0, 1], [0], [0, 0, 0, 1, 1, 0], [], []>} : vector<2x8x32xf32>, vector<128x32xf32>, vector<2x8x128xf32> -> vector<2x8x128xf32>
    "tpu.trace_stop"() : () -> ()
    %c0_148 = arith.constant 0 : index
    %c0_149 = arith.constant 0 : index
    %c0_150 = arith.constant 0 : index
    %455 = vector.load %arg17[%c0_148, %c0_149, %c0_150] : memref<2x8x128xf32, #tpu.memory_space<vmem>>, vector<2x8x128xf32>
    tpu.vector_store %arg17[%c0_148, %c0_149, %c0_150], %454 {strides = array<i32>} : memref<2x8x128xf32, #tpu.memory_space<vmem>>, vector<2x8x128xf32>,
    return
  }
}

</mosaic_0001>

<bundles_post_ra>
// kernel: custom_gpt_forward.1
= control target key start
LH: loop header
LB: loop body
LE: loop exit
PB: predicated region body
PF: predicated region fallthrough
CT: control target
= control target key end

     0   :  { %s5706_s0 = inlined_call_operand.vmem [shape: s32[2,8,1], index: 0, kind: input, shape index: {}]   ;;  %s5707_s1 = inlined_call_operand.vmem [shape: f32[2,8,1], index: 1, kind: input, shape index: {}]   ;;  %s5708_s2 = inlined_call_operand.vmem [shape: f32[8,32], index: 2, kind: input, shape index: {}]   ;;  %s5709_s3 = inlined_call_operand.vmem [shape: f32[1,32], index: 3, kind: input, shape index: {}]   ;;  %s5710_s4 = inlined_call_operand.vmem [shape: f32[1,32], index: 4, kind: input, shape index: {}]   ;;  %s5711_s5 = inlined_call_operand.vmem [shape: f32[128,32], index: 5, kind: input, shape index: {}]   ;;  %s5712_s6 = inlined_call_operand.vmem [shape: f32[2,32], index: 6, kind: input, shape index: {}]   ;;  %s5713_s7 = inlined_call_operand.vmem [shape: f32[2,8,128], index: 7, kind: input, shape index: {}]   ;;  %s5714_s8 = inlined_call_operand.vmem [shape: f32[2,2,32,16], index: 8, kind: input, shape index: {}]   ;;  %s5715_s9 = inlined_call_operand.vmem [shape: f32[2,2,32,16], index: 9, kind: input, shape index: {}]   ;;  %s5716_s10 = inlined_call_operand.vmem [shape: f32[2,2,32,16], index: 10, kind: input, shape index: {}]   ;;  %s5717_s11 = inlined_call_operand.vmem [shape: f32[2,2,1,16], index: 11, kind: input, shape index: {}]   ;;  %s5718_s12 = inlined_call_operand.vmem [shape: f32[2,2,1,16], index: 12, kind: input, shape index: {}]   ;;  %s5719_s13 = inlined_call_operand.vmem [shape: f32[2,2,1,16], index: 13, kind: input, shape index: {}]   ;;  %s5720_s14 = inlined_call_operand.vmem [shape: f32[2,2,16,32], index: 14, kind: input, shape index: {}]   ;;  %s5721_s15 = inlined_call_operand.vmem [shape: f32[2,32,128], index: 15, kind: input, shape index: {}]   ;;  %s5722_s16 = inlined_call_operand.vmem [shape: f32[2,128,32], index: 16, kind: input, shape index: {}]   ;;  %s5723_s17 = inlined_call_operand.hbm [shape: f32[2,8,128], index: 17, kind: output, shape index: {}]  }
   0x1   :  { %5726 = sst [smem:[#allocation5_spill]] %s5706_s0 }
   0x2   :  { %5727 = sst [smem:[#allocation6_spill]] %s5707_s1 }
   0x3   :  { %s5728_s26 = sld [smem:[#allocation5_spill]]  ;;  %v73_v1 = vld [vmem:[%s5711_s5] sm:$0xff]  ;;  %v4793_v2 = vmov 0   ;;  %v74_v3 = vld [vmem:[%s5711_s5 + $0x8] sm:$0xff]  ;;  %v75_v4 = vld [vmem:[%s5711_s5 + $0x10] sm:$0xff] }
   0x4   :  { %4707 = vset.pattern.permute.xlu0 %v4793_v2  ;;  %v76_v5 = vld [vmem:[%s5711_s5 + $0x18] sm:$0xff]  ;;  %4708 = vset.pattern.permute.xlu1 %v4793_v2  ;;  %v4424_v6 = vpack.c.bf16 %v74_v3, %v73_v1  ;;  %v77_v9 = vld [vmem:[%s5711_s5 + $0x20] sm:$0xff]  ;;  %v78_v10 = vld [vmem:[%s5711_s5 + $0x28] sm:$0xff] }
   0x5   :  { %v4428_v7 = vpack.c.bf16 %v76_v5, %v75_v4  ;;  %v4432_v11 = vpack.c.bf16 %v78_v10, %v77_v9 }
   0x6   :  { %4425 = vmatprep.subr.bf16.mxu0 %v4424_v6 }
   0x7   :  { %4427 = vmatpush3.bf16.msra.mxu0 %v4424_v6 }
   0x8   :  { %4429 = vmatprep.subr.bf16.mxu0 %v4428_v7 }
   0x9   :  { %v57_v0 = vld [vmem:[%s5728_s26] sm:$0xff]  ;;  %v58_v8 = vld [vmem:[%s5728_s26 + $0x8] sm:$0xff] }
   0xa   :  { %62 = vperm.xlu0 %4707, %v57_v0  }
   0xe   :  { %65 = vperm.xlu0 %4707, %v58_v8  }
   0xf   :  { %22 = vsyncpa [#allocation3], 0  ;;  %v79_v12 = vld [vmem:[%s5711_s5 + $0x30] sm:$0xff]  ;;  %v80_v13 = vld [vmem:[%s5711_s5 + $0x38] sm:$0xff]  ;;  %s5729_s18 = sld [smem:[#allocation6_spill]]  ;;  %4431 = vmatpush3.bf16.msra.mxu0 %v4428_v7  ;;  %v59_v29 = vlaneseq  ;;  %v4794_v32 = vmov 1.0  }
  0x10   :  { %4433 = vmatprep.subr.bf16.mxu0 %v4432_v11  ;;  %v4436_v16 = vpack.c.bf16 %v80_v13, %v79_v12  ;;  %v81_v17 = vld [vmem:[%s5711_s5 + $0x40] sm:$0xff]  ;;  %v82_v18 = vld [vmem:[%s5711_s5 + $0x48] sm:$0xff]  ;;  %v83_v20 = vld [vmem:[%s5711_s5 + $0x50] sm:$0xff]  ;;  %vm235_vm2 = vcmask 261120   ;;  %vm4796_vm3 = vmmov 0   ;;  %vm524_vm4 = vcmask 130048  }
  0x11   :  { %v4440_v19 = vpack.c.bf16 %v82_v18, %v81_v17  ;;  %v84_v21 = vld [vmem:[%s5711_s5 + $0x58] sm:$0xff]  ;;  %v85_v23 = vld [vmem:[%s5711_s5 + $0x60] sm:$0xff]  ;;  %v86_v24 = vld [vmem:[%s5711_s5 + $0x68] sm:$0xff]  ;;  %v4951_v30 = vand.u32 127, %v59_v29  ;;  %v5007_v17 = vshrl.u32 %v59_v29, 7  ;;  %vm681_vm6 = vcmask 64512  }
  0x12   :  { %v4444_v22 = vpack.c.bf16 %v84_v21, %v83_v20  ;;  %v4448_v25 = vpack.c.bf16 %v86_v24, %v85_v23  ;;  %v87_v26 = vld [vmem:[%s5711_s5 + $0x70] sm:$0xff]  ;;  %v88_v27 = vld [vmem:[%s5711_s5 + $0x78] sm:$0xff]  ;;  %v3667_v35 = vld [vmem:[%s5709_s3] ss:$0 sm:$0xff] }
  0x13   :  { %4435 = vmatpush3.bf16.msra.mxu0 %v4432_v11  ;;  %v4452_v28 = vpack.c.bf16 %v88_v27, %v87_v26  ;;  %v3668_v38 = vld [vmem:[%s5710_s4] ss:$0 sm:$0xff]  ;;  %v202_v62 = vld [vmem:[%s5714_s8 + $0x8] sm:$0xff]  ;;  %v203_v3 = vld [vmem:[%s5714_s8 + $0x10] sm:$0xff]  ;;  %v271_v21 = vsub.s32 1, %v5007_v17  ;;  %vm5071_vm5 = vcmp.le.s32.totalorder %v4951_v30, %v5007_v17 }
  0x14   :  { %4437 = vmatprep.subr.bf16.mxu0 %v4436_v16  ;;  %v119_v40 = vld [vmem:[%s5708_s2] sm:$0xff]  ;;  %v218_v1 = vld [vmem:[%s5716_s10 + $0x8] sm:$0xff]  ;;  %v204_v4 = vld [vmem:[%s5714_s8 + $0x18] sm:$0xff] }
  0x15   :  { %v89_v14 = vld [vmem:[%s5729_s18] sm:$0xff]  ;;  %v90_v15 = vld [vmem:[%s5729_s18 + $0x8] sm:$0xff]  ;;  %v4460_v5 = vpack.c.bf16 %v204_v4, %v203_v3  ;;  %v219_v6 = vld [vmem:[%s5716_s10 + $0x10] sm:$0xff] }
  0x16   :  { %94 = vperm.xlu1 %4708, %v89_v14   ;;  %v201_v61 = vld [vmem:[%s5714_s8] sm:$0xff]  ;;  %v220_v7 = vld [vmem:[%s5716_s10 + $0x18] sm:$0xff]  ;;  %v210_v10 = vld [vmem:[%s5715_s9 + $0x8] sm:$0xff] }
  0x17   :  { %4439 = vmatpush3.bf16.msra.mxu0 %v4436_v16  ;;  %v4456_v63 = vpack.c.bf16 %v202_v62, %v201_v61  ;;  %v217_v0 = vld [vmem:[%s5716_s10] sm:$0xff]  ;;  %v4476_v8 = vpack.c.bf16 %v220_v7, %v219_v6  ;;  %vm5606_vm7 = vmpackc.low %vm235_vm2, %vm235_vm2 }
  0x18   :  { %4441 = vmatprep.subr.bf16.mxu0 %v4440_v19  ;;  %v4472_v2 = vpack.c.bf16 %v218_v1, %v217_v0  ;;  %v209_v9 = vld [vmem:[%s5715_s9] sm:$0xff] }
  0x19   :  { %v4464_v11 = vpack.c.bf16 %v210_v10, %v209_v9  ;;  %v5013_v20 = vld [vmem:[%s5713_s7] sm:$0xff]  ;;  %v206_v9 = vld [vmem:[%s5714_s8 + $0x28] sm:$0xff] }
  0x1a   :  { %99 = vperm.xlu1 %4708, %v90_v15   ;;  %4473 = vmatprep.subr.bf16.mxu1 %v4472_v2  ;;  %v272_v24 = vrot.slane %v5013_v20, %v271_v21 }
  0x1b   :  { %4443 = vmatpush3.bf16.msra.mxu0 %v4440_v19  ;;  %4475 = vmatpush3.bf16.msra.mxu1 %v4472_v2  ;;  %v265_v19 = vsub.s32 0, %v5007_v17 }
  0x1c   :  { %4445 = vmatprep.subr.bf16.mxu0 %v4444_v22  ;;  %4477 = vmatprep.subr.bf16.mxu1 %v4476_v8 }
  0x1f   :  { %4447 = vmatpush3.bf16.msra.mxu0 %v4444_v22  ;;  %4479 = vmatpush3.bf16.msra.mxu1 %v4476_v8  ;;  %v266_v22 = vrot.slane %v5013_v20, %v265_v19  ;;  %v205_v8 = vld [vmem:[%s5714_s8 + $0x20] sm:$0xff] }
  0x20   :  { %4449 = vmatprep.subr.bf16.mxu0 %v4448_v25  ;;  %v4480_v10 = vpack.c.bf16 %v206_v9, %v205_v8 }
  0x23   :  { %4451 = vmatpush3.bf16.msra.mxu0 %v4448_v25 }
  0x24   :  { %4453 = vmatprep.subr.bf16.mxu0 %v4452_v28 }
  0x27   :  { %4455 = vmatpush3.bf16.msra.mxu0 %v4452_v28 }
  0x28   :  { %4457 = vmatprep.subr.bf16.mxu0 %v4456_v63 }
  0x89   :  { %v63_v31 = vpop.permute.xlu0 %62 }
  0x8a   :  { %vm67_vm0 = vcmp.eq.s32.totalorder %v4951_v30, %v63_v31  ;;  %v211_v31 = vld [vmem:[%s5715_s9 + $0x10] sm:$0xff] }
  0x8b   :  { %4054 = vmatprep.mubr.msk.f32.mxu0 %vm67_vm0, %v4794_v32 }
  0x8d   :  { %v66_v33 = vpop.permute.xlu0 %65 }
  0x8e   :  { %vm68_vm1 = vcmp.eq.s32.totalorder %v4951_v30, %v66_v33 }
  0x8f   :  { %4055 = vmatmul.mubr.msk.f32.vlgmr.msra.gmra.mrb[0].mxu0 %vm68_vm1, %v4794_v32  ;;  %v212_v32 = vld [vmem:[%s5715_s9 + $0x18] sm:$0xff] }
  0x90   :  { %4459 = vmatpush3.bf16.msra.mxu0 %v4456_v63 }
  0x91   :  { %4461 = vmatprep.subr.bf16.mxu0 %v4460_v5 }
  0x94   :  { %4463 = vmatpush3.bf16.msra.mxu0 %v4460_v5 }
  0x95   :  { %v95_v34 = vpop.permute.xlu1 %94  ;;  %4465 = vmatprep.subr.bf16.mxu0 %v4464_v11 }
  0x96   :  { %v108_v39 = vmul.f32 %v3667_v35, %v95_v34 }
  0x98   :  { %v117_v42 = vadd.f32 %v3668_v38, %v108_v39 }
  0x99   :  { %v100_v36 = vpop.permute.xlu1 %99 }
  0x9a   :  { %v109_v37 = vmul.f32 %v3667_v35, %v100_v36  ;;  %v4468_v35 = vpack.c.bf16 %v212_v32, %v211_v31  ;;  %v4795_v36 = vmov 0.0  }
  0x9b   :  { %4090 = vmatprep.subr.mxu1 %v4795_v36 }
  0x9c   :  { %v118_v41 = vadd.f32 %v3668_v38, %v109_v37  ;;  %v3677_v37 = vld [vmem:[%s5719_s13] ss:$0 sm:$0xff] }
 0x162   :  { %v4056_v43 = vpop.f32.mrb[0].mxu0 }
 0x163   :  { %v192_v44 = vadd.f32 %v4056_v43, %v119_v40  ;;  %v186_v45 = vpop.f32.mrb[1].mxu0  ;;  %v3674_v43 = vld [vmem:[%s5718_s12] ss:$0 sm:$0xff] }
 0x164   :  { %v187_v46 = vadd.f32 %v186_v45, %v119_v40 }
 0x165   :  { %v4964_v47 = vadd.f32 %v192_v44, %v118_v41 }
 0x166   :  { %v4966_v48 = vadd.f32 %v187_v46, %v117_v42  ;;  %v3671_v46 = vld [vmem:[%s5717_s11] ss:$0 sm:$0xff] }
 0x167   :  { %v239_v49 = vsel %vm235_vm2, %v4964_v47, 0.0 }
 0x168   :  { %240 = vadd.xlane.f32.xlu1 %v239_v49  ;;  %v236_v50 = vsel %vm235_vm2, %v4966_v48, 0.0 }
 0x169   :  { %237 = vadd.xlane.f32.xlu0 %v236_v50 }
 0x1f5   :  { %v241_v51 = vpop.xlane.xlu1 %240 }
 0x1f6   :  { %v244_v52 = vmul.f32 0.03125, %v241_v51  ;;  %v238_v53 = vpop.xlane.xlu0 %237 }
 0x1f7   :  { %v243_v54 = vmul.f32 0.03125, %v238_v53 }
 0x1f8   :  { %v246_v55 = vsub.f32 %v4964_v47, %v244_v52 }
 0x1f9   :  { %v245_v56 = vsub.f32 %v4966_v48, %v243_v54 }
 0x1fa   :  { %v248_v59 = vmul.f32 %v246_v55, %v246_v55 }
 0x1fb   :  { %v247_v57 = vmul.f32 %v245_v56, %v245_v56 }
 0x1fc   :  { %v252_v60 = vsel %vm235_vm2, %v248_v59, 0.0 }
 0x1fd   :  { %v249_v58 = vsel %vm235_vm2, %v247_v57, 0.0 }
 0x1fe   :  { %250 = vadd.xlane.f32.xlu0 %v249_v58 }
 0x202   :  { %253 = vadd.xlane.f32.xlu0 %v252_v60 }
 0x28b   :  { %v251_v12 = vpop.xlane.xlu0 %250 }
 0x28c   :  { %v255_v13 = vmul.f32 0.03125, %v251_v12  ;;  %v214_v12 = vld [vmem:[%s5715_s9 + $0x28] sm:$0xff] }
 0x28e   :  { %v257_v14 = vadd.f32 1e-05, %v255_v13 }
 0x28f   :  { %v254_v15 = vpop.xlane.xlu0 %253 }
 0x290   :  { %4709 = vrsqrt.f32 %v257_v14  ;;  %v256_v16 = vmul.f32 0.03125, %v254_v15 }
 0x292   :  { %v258_v18 = vadd.f32 1e-05, %v256_v16  ;;  %v207_v16 = vld [vmem:[%s5714_s8 + $0x30] sm:$0xff] }
 0x294   :  { %4711 = vrsqrt.f32 %v258_v18  ;;  %v208_v18 = vld [vmem:[%s5714_s8 + $0x38] sm:$0xff] }
 0x29a   :  { %v4710_v23 = vpop.eup %4709 }
 0x29b   :  { %v261_v25 = vmul.f32 %v4710_v23, %v245_v56 }
 0x29d   :  { %v267_v26 = vmul.f32 %v266_v22, %v261_v25  ;;  %v215_v25 = vld [vmem:[%s5715_s9 + $0x30] sm:$0xff] }
 0x29e   :  { %v4712_v27 = vpop.eup %4711 }
 0x29f   :  { %v5022_v28 = vadd.f32 %v272_v24, %v267_v26  ;;  %v262_v29 = vmul.f32 %v4712_v27, %v246_v55  ;;  %v216_v26 = vld [vmem:[%s5715_s9 + $0x38] sm:$0xff]  ;;  %v221_v27 = vld [vmem:[%s5716_s10 + $0x20] sm:$0xff] }
 0x2a1   :  { %v268_v33 = vmul.f32 %v266_v22, %v262_v29  ;;  %4065 = vmatprep.mubr.msk.f32.mxu0 %vm235_vm2, %v5022_v28  ;;  %4087 = vmatprep.mubr.msk.f32.mxu1 %vm235_vm2, %v5022_v28  ;;  %v222_v29 = vld [vmem:[%s5716_s10 + $0x28] sm:$0xff] }
 0x2a3   :  { %v5034_v34 = vadd.f32 %v272_v24, %v268_v33  ;;  %v4484_v24 = vpack.c.bf16 %v208_v18, %v207_v16  ;;  %v4492_v33 = vpack.c.bf16 %v216_v26, %v215_v25  ;;  %v231_v26 = vld [vmem:[%s5720_s14] sm:$0xff] }
 0x2a5   :  { %4066 = vmatmul.mubr.msk.f32.vlgmr.msra.gmra.mrb[2].mxu0 %vm235_vm2, %v5034_v34  ;;  %4088 = vmatmul.mubr.msk.f32.vlgmr.msra.gmra.mrb[0].mxu1 %vm235_vm2, %v5034_v34 }
 0x2a6   :  { %4467 = vmatpush3.bf16.msra.mxu0 %v4464_v11  ;;  %4076 = vmatprep.mubr.msk.f32.mxu0 %vm235_vm2, %v5022_v28  ;;  %v213_v11 = vld [vmem:[%s5715_s9 + $0x20] sm:$0xff] }
 0x2a7   :  { %4469 = vmatprep.subr.bf16.mxu0 %v4468_v35  ;;  %4092 = vmatprep.mubr.msk.f32.mxu1 %vm4796_vm3, %v4795_v36  ;;  %v4488_v13 = vpack.c.bf16 %v214_v12, %v213_v11 }
 0x2aa   :  { %4471 = vmatpush3.bf16.msra.mxu0 %v4468_v35  ;;  %v4496_v35 = vpack.c.bf16 %v222_v29, %v221_v27  ;;  %v232_v27 = vld [vmem:[%s5720_s14 + $0x8] sm:$0xff] }
 0x2ab   :  { %4100 = vmatprep.subr.mxu0 %v4795_v36  ;;  %v4508_v29 = vpack.c.bf16 %v232_v27, %v231_v26  ;;  %v1735_v26 = vld [vmem:[%s5722_s16 + $0x28] sm:$0xff] }
 0x2ad   :  { %4077 = vmatmul.mubr.msk.f32.vlgmr.msra.gmra.mrb[4].mxu0 %vm235_vm2, %v5034_v34 }
 0x2ae   :  { %4102 = vmatprep.mubr.msk.f32.mxu0 %vm4796_vm3, %v4795_v36 }
 0x378   :  { %v4067_v38 = vpop.f32.mrb[2].mxu0  ;;  %v4089_v39 = vpop.f32.mrb[0].mxu1 }
 0x379   :  { %v353_v40 = vpop.f32.mrb[3].mxu0  ;;  %v515_v41 = vpop.f32.mrb[1].mxu1  ;;  %v359_v52 = vadd.f32 %v4067_v38, %v3671_v46  ;;  %v521_v53 = vadd.f32 %v4089_v39, %v3677_v37  ;;  %v224_v38 = vld [vmem:[%s5716_s10 + $0x38] sm:$0xff] }
 0x37a   :  { %v516_v42 = vadd.f32 %v3677_v37, %v515_v41  ;;  %v354_v50 = vadd.f32 %v3671_v46, %v353_v40  ;;  %v223_v37 = vld [vmem:[%s5716_s10 + $0x30] sm:$0xff] }
 0x37b   :  { %v4500_v39 = vpack.c.bf16 %v224_v38, %v223_v37  ;;  %v1581_v37 = vsub.s32 4, %v5007_v17 }
 0x37c   :  { %4101 = vmatpush3.msra.mxu0 %v516_v42 }
 0x37d   :  { %4481 = vmatprep.subr.bf16.mxu0 %v4480_v10  ;;  %v1582_v38 = vrot.slane %v5013_v20, %v1581_v37 }
 0x380   :  { %v4078_v44 = vpop.f32.mrb[4].mxu0 }
 0x381   :  { %v434_v45 = vpop.f32.mrb[5].mxu0  ;;  %v440_v51 = vadd.f32 %v4078_v44, %v3674_v43 }
 0x382   :  { %v435_v49 = vadd.f32 %v3674_v43, %v434_v45  ;;  %v3689_v45 = vld [vmem:[%s5718_s12 + $0x1] ss:$0 sm:$0xff] }
 0x384   :  { %4091 = vmatpush3.xpose.msk.msra.mxu1 %vm524_vm4, %v435_v49 }
 0x385   :  { %4095 = vmatprep.subr.mxu1 %v4795_v36 }
 0x387   :  { %4093 = vmatmul.mubr.msk.f32.vlgmr.msra.gmra.mrb[2].mxu1 %vm524_vm4, %v354_v50 }
 0x388   :  { %4096 = vmatpush3.xpose.msk.msra.mxu1 %vm524_vm4, %v440_v51  ;;  %4097 = vmatprep.mubr.msk.f32.mxu1 %vm4796_vm3, %v4795_v36  ;;  %v3692_v51 = vld [vmem:[%s5719_s13 + $0x1] ss:$0 sm:$0xff] }
 0x389   :  { %4105 = vmatprep.subr.mxu1 %v4795_v36 }
 0x38b   :  { %4098 = vmatmul.mubr.msk.f32.vlgmr.msra.gmra.mrb[4].mxu1 %vm524_vm4, %v359_v52 }
 0x38c   :  { %4106 = vmatpush3.msra.mxu1 %v521_v53  ;;  %4107 = vmatprep.mubr.msk.f32.mxu1 %vm4796_vm3, %v4795_v36 }
 0x38d   :  { %4489 = vmatprep.subr.bf16.mxu1 %v4488_v13 }
 0x45a   :  { %v597_v55 = vpop.f32.mrb[2].mxu1 }
 0x45b   :  { %v679_v56 = vsel %vm5071_vm5, %v597_v55, -1e+09  ;;  %v4094_v57 = vpop.f32.mrb[3].mxu1 }
 0x45c   :  { %v682_v58 = vsel %vm681_vm6, %v679_v56, -inf }
 0x45d   :  { %683 = vmax.xlane.f32.xlu0 %v682_v58 }
 0x45e   :  { %v673_v59 = vpop.f32.mrb[4].mxu1 }
 0x45f   :  { %v680_v60 = vsel %vm5071_vm5, %v673_v59, -1e+09  ;;  %v4099_v61 = vpop.f32.mrb[5].mxu1 }
 0x460   :  { %v685_v62 = vsel %vm681_vm6, %v680_v60, -inf }
 0x461   :  { %686 = vmax.xlane.f32.xlu1 %v685_v62 }
 0x4ea   :  { %v684_v30 = vpop.xlane.xlu0 %683 }
 0x4eb   :  { %v688_v63 = vsub.f32 %v679_v56, %v684_v30 }
 0x4ed   :  { %v690_v0 = vmul.f32 1.442695, %v688_v63 }
 0x4ee   :  { %v687_v1 = vpop.xlane.xlu1 %686 }
 0x4ef   :  { %4713 = vpow2.f32 %v690_v0  ;;  %v689_v2 = vsub.f32 %v680_v60, %v687_v1 }
 0x4f1   :  { %v692_v3 = vmul.f32 1.442695, %v689_v2 }
 0x4f3   :  { %4715 = vpow2.f32 %v692_v3 }
 0x4f9   :  { %v4714_v4 = vpop.eup %4713 }
 0x4fa   :  { %v694_v5 = vsel %vm681_vm6, %v4714_v4, 0.0 }
 0x4fb   :  { %695 = vadd.xlane.f32.xlu0 %v694_v5 }
 0x4fd   :  { %v4716_v6 = vpop.eup %4715 }
 0x4fe   :  { %v697_v7 = vsel %vm681_vm6, %v4716_v6, 0.0 }
 0x4ff   :  { %698 = vadd.xlane.f32.xlu1 %v697_v7 }
 0x588   :  { %v696_v14 = vpop.xlane.xlu0 %695 }
 0x589   :  { %4717 = vrcp.f32 %v696_v14 }
 0x58c   :  { %v699_v15 = vpop.xlane.xlu1 %698 }
 0x58d   :  { %4719 = vrcp.f32 %v699_v15 }
 0x593   :  { %v4718_v22 = vpop.eup %4717 }
 0x594   :  { %v702_v23 = vmul.f32 %v4718_v22, %v4714_v4 }
 0x596   :  { %4103 = vmatmul.mubr.msk.f32.vlgmr.msra.gmra.mrb[6].mxu0 %vm681_vm6, %v702_v23  ;;  %v233_v23 = vld [vmem:[%s5720_s14 + $0x10] sm:$0xff] }
 0x597   :  { %v4720_v31 = vpop.eup %4719  ;;  %4483 = vmatpush3.bf16.msra.mxu0 %v4480_v10  ;;  %4118 = vmatprep.mubr.msk.f32.mxu0 %vm235_vm2, %v5022_v28 }
 0x598   :  { %v703_v32 = vmul.f32 %v4720_v31, %v4716_v6  ;;  %4485 = vmatprep.subr.bf16.mxu0 %v4484_v24 }
 0x59a   :  { %4108 = vmatmul.mubr.msk.f32.vlgmr.msra.gmra.mrb[6].mxu1 %vm681_vm6, %v703_v32 }
 0x59b   :  { %4487 = vmatpush3.bf16.msra.mxu0 %v4484_v24  ;;  %4491 = vmatpush3.bf16.msra.mxu1 %v4488_v13  ;;  %v234_v24 = vld [vmem:[%s5720_s14 + $0x18] sm:$0xff] }
 0x59c   :  { %4129 = vmatprep.mubr.msk.f32.mxu1 %vm235_vm2, %v5022_v28  ;;  %4493 = vmatprep.subr.bf16.mxu1 %v4492_v33  ;;  %v4504_v25 = vpack.c.bf16 %v234_v24, %v233_v23  ;;  %v1733_v23 = vld [vmem:[%s5722_s16 + $0x18] sm:$0xff] }
 0x59d   :  { %4497 = vmatprep.subr.bf16.mxu0 %v4496_v35 }
 0x59e   :  { %4119 = vmatmul.mubr.msk.f32.vlgmr.msra.gmra.mrb[8].mxu0 %vm235_vm2, %v5034_v34 }
 0x59f   :  { %4495 = vmatpush3.bf16.msra.mxu1 %v4492_v33  ;;  %4499 = vmatpush3.bf16.msra.mxu0 %v4496_v35 }
 0x5a0   :  { %4140 = vmatprep.mubr.msk.f32.mxu0 %vm235_vm2, %v5022_v28  ;;  %4501 = vmatprep.subr.bf16.mxu0 %v4500_v39 }
 0x5a1   :  { %4143 = vmatprep.subr.mxu1 %v4795_v36 }
 0x5a2   :  { %4130 = vmatmul.mubr.msk.f32.vlgmr.msra.gmra.mrb[8].mxu1 %vm235_vm2, %v5034_v34 }
 0x5a3   :  { %4503 = vmatpush3.bf16.msra.mxu0 %v4500_v39  ;;  %4145 = vmatprep.mubr.msk.f32.mxu1 %vm4796_vm3, %v4795_v36 }
 0x5a4   :  { %4153 = vmatprep.subr.mxu0 %v4795_v36 }
 0x5a6   :  { %4141 = vmatmul.mubr.msk.f32.vlgmr.msra.gmra.mrb[10].mxu0 %vm235_vm2, %v5034_v34  ;;  %v3686_v34 = vld [vmem:[%s5717_s11 + $0x1] ss:$0 sm:$0xff] }
 0x5a7   :  { %4155 = vmatprep.mubr.msk.f32.mxu0 %vm4796_vm3, %v4795_v36 }
 0x669   :  { %v5139_v40 = vpop.f32.mrb[6].mxu0 }
 0x66a   :  { %v4104_v28 = vpop.f32.mrb[7].mxu0 }
 0x66d   :  { %v5141_v41 = vpop.f32.mrb[6].mxu1 }
 0x66e   :  { %v4109_v42 = vpop.f32.mrb[7].mxu1 }
 0x671   :  { %v4120_v43 = vpop.f32.mrb[8].mxu0 }
 0x672   :  { %v922_v44 = vpop.f32.mrb[9].mxu0  ;;  %v928_v58 = vadd.f32 %v4120_v43, %v3686_v34 }
 0x673   :  { %v923_v53 = vadd.f32 %v3686_v34, %v922_v44 }
 0x675   :  { %v4131_v46 = vpop.f32.mrb[8].mxu1 }
 0x676   :  { %v1003_v49 = vpop.f32.mrb[9].mxu1  ;;  %v1009_v56 = vadd.f32 %v4131_v46, %v3689_v45 }
 0x677   :  { %v1004_v50 = vadd.f32 %v3689_v45, %v1003_v49 }
 0x679   :  { %v4142_v52 = vpop.f32.mrb[10].mxu0  ;;  %4144 = vmatpush3.xpose.msk.msra.mxu1 %vm524_vm4, %v1004_v50 }
 0x67a   :  { %v1084_v55 = vpop.f32.mrb[11].mxu0  ;;  %4148 = vmatprep.subr.mxu1 %v4795_v36  ;;  %v1090_v59 = vadd.f32 %v4142_v52, %v3692_v51 }
 0x67b   :  { %v1085_v57 = vadd.f32 %v3692_v51, %v1084_v55 }
 0x67c   :  { %4146 = vmatmul.mubr.msk.f32.vlgmr.msra.gmra.mrb[10].mxu1 %vm524_vm4, %v923_v53 }
 0x67d   :  { %4149 = vmatpush3.xpose.msk.msra.mxu1 %vm524_vm4, %v1009_v56  ;;  %4154 = vmatpush3.msra.mxu0 %v1085_v57  ;;  %v1623_v56 = vld [vmem:[%s5721_s15] sm:$0xff]  ;;  %v1624_v57 = vld [vmem:[%s5721_s15 + $0x8] sm:$0xff] }
 0x67e   :  { %4150 = vmatprep.mubr.msk.f32.mxu1 %vm4796_vm3, %v4795_v36  ;;  %4158 = vmatprep.subr.mxu1 %v4795_v36 }
 0x67f   :  { %4505 = vmatprep.subr.bf16.mxu0 %v4504_v25 }
 0x680   :  { %4151 = vmatmul.mubr.msk.f32.vlgmr.msra.gmra.mrb[12].mxu1 %vm524_vm4, %v928_v58  ;;  %v4512_v58 = vpack.c.bf16 %v1624_v57, %v1623_v56 }
 0x681   :  { %4159 = vmatpush3.msra.mxu1 %v1090_v59  ;;  %4160 = vmatprep.mubr.msk.f32.mxu1 %vm4796_vm3, %v4795_v36  ;;  %v1625_v59 = vld [vmem:[%s5721_s15 + $0x10] sm:$0xff] }
 0x682   :  { %4513 = vmatprep.subr.bf16.mxu1 %v4512_v58 }
 0x74f   :  { %v1165_v60 = vpop.f32.mrb[10].mxu1 }
 0x750   :  { %v1245_v61 = vsel %vm5071_vm5, %v1165_v60, -1e+09  ;;  %v4147_v62 = vpop.f32.mrb[11].mxu1  ;;  %v1626_v60 = vld [vmem:[%s5721_s15 + $0x18] sm:$0xff] }
 0x751   :  { %v1247_v30 = vsel %vm681_vm6, %v1245_v61, -inf  ;;  %v1730_v62 = vld [vmem:[%s5722_s16] sm:$0xff] }
 0x752   :  { %1248 = vmax.xlane.f32.xlu1 %v1247_v30  ;;  %v1731_v30 = vld [vmem:[%s5722_s16 + $0x8] sm:$0xff] }
 0x753   :  { %v1241_v63 = vpop.f32.mrb[12].mxu1 }
 0x754   :  { %v1246_v0 = vsel %vm5071_vm5, %v1241_v63, -1e+09  ;;  %v4152_v1 = vpop.f32.mrb[13].mxu1  ;;  %v4520_v63 = vpack.c.bf16 %v1731_v30, %v1730_v62 }
 0x755   :  { %v1250_v2 = vsel %vm681_vm6, %v1246_v0, -inf }
 0x756   :  { %1251 = vmax.xlane.f32.xlu0 %v1250_v2 }
 0x7df   :  { %v1249_v3 = vpop.xlane.xlu1 %1248 }
 0x7e0   :  { %v1253_v4 = vsub.f32 %v1245_v61, %v1249_v3  ;;  %v4516_v61 = vpack.c.bf16 %v1626_v60, %v1625_v59 }
 0x7e2   :  { %v1255_v5 = vmul.f32 1.442695, %v1253_v4 }
 0x7e3   :  { %v1252_v6 = vpop.xlane.xlu0 %1251 }
 0x7e4   :  { %4721 = vpow2.f32 %v1255_v5  ;;  %v1254_v7 = vsub.f32 %v1246_v0, %v1252_v6  ;;  %v1613_v6 = vsub.s32 2, %v5007_v17 }
 0x7e6   :  { %v1257_v8 = vmul.f32 1.442695, %v1254_v7  ;;  %v1619_v7 = vsub.s32 3, %v5007_v17 }
 0x7e8   :  { %4723 = vpow2.f32 %v1257_v8  ;;  %v1614_v8 = vrot.slane %v5013_v20, %v1613_v6 }
 0x7ee   :  { %v4722_v9 = vpop.eup %4721 }
 0x7ef   :  { %v1259_v10 = vsel %vm681_vm6, %v4722_v9, 0.0 }
 0x7f0   :  { %1260 = vadd.xlane.f32.xlu1 %v1259_v10 }
 0x7f2   :  { %v4724_v11 = vpop.eup %4723 }
 0x7f3   :  { %v1262_v12 = vsel %vm681_vm6, %v4724_v11, 0.0 }
 0x7f4   :  { %1263 = vadd.xlane.f32.xlu0 %v1262_v12 }
 0x87d   :  { %v1261_v13 = vpop.xlane.xlu1 %1260 }
 0x87e   :  { %4725 = vrcp.f32 %v1261_v13  ;;  %v1620_v13 = vrot.slane %v5013_v20, %v1619_v7 }
 0x881   :  { %v1264_v14 = vpop.xlane.xlu0 %1263 }
 0x882   :  { %4727 = vrcp.f32 %v1264_v14 }
 0x888   :  { %v4726_v15 = vpop.eup %4725 }
 0x889   :  { %v1267_v16 = vmul.f32 %v4726_v15, %v4722_v9 }
 0x88b   :  { %4156 = vmatmul.mubr.msk.f32.vlgmr.msra.gmra.mrb[12].mxu0 %vm681_vm6, %v1267_v16 }
 0x88c   :  { %v4728_v18 = vpop.eup %4727  ;;  %4507 = vmatpush3.bf16.msra.mxu0 %v4504_v25  ;;  %v1734_v25 = vld [vmem:[%s5722_s16 + $0x20] sm:$0xff] }
 0x88d   :  { %v1268_v22 = vmul.f32 %v4728_v18, %v4724_v11  ;;  %4509 = vmatprep.subr.bf16.mxu0 %v4508_v29  ;;  %v4528_v27 = vpack.c.bf16 %v1735_v26, %v1734_v25 }
 0x88f   :  { %4161 = vmatmul.mubr.msk.f32.vlgmr.msra.gmra.mrb[14].mxu1 %vm681_vm6, %v1268_v22  ;;  %v1732_v22 = vld [vmem:[%s5722_s16 + $0x10] sm:$0xff] }
 0x890   :  { %4515 = vmatpush3.bf16.msra.mxu1 %v4512_v58  ;;  %v4524_v24 = vpack.c.bf16 %v1733_v23, %v1732_v22 }
 0x891   :  { %4517 = vmatprep.subr.bf16.mxu1 %v4516_v61 }
 0x894   :  { %4519 = vmatpush3.bf16.msra.mxu1 %v4516_v61 }
 0x95e   :  { %v1338_v31 = vpop.f32.mrb[12].mxu0 }
 0x95f   :  { %v4157_v32 = vpop.f32.mrb[13].mxu0  ;;  %4167 = vmatprep.mubr.msk.f32.mxu0 %vm524_vm4, %v1338_v31  ;;  %v1737_v31 = vld [vmem:[%s5722_s16 + $0x38] sm:$0xff] }
 0x962   :  { %v1411_v33 = vpop.f32.mrb[14].mxu1 }
 0x963   :  { %v4162_v35 = vpop.f32.mrb[15].mxu1  ;;  %4168 = vmatmul.mubr.msk.f32.vlgmr.msra.gmra.mrb[14].mxu0 %vm524_vm4, %v1411_v33  ;;  %v1738_v33 = vld [vmem:[%s5722_s16 + $0x40] sm:$0xff] }
 0x964   :  { %4511 = vmatpush3.bf16.msra.mxu0 %v4508_v29  ;;  %4174 = vmatprep.mubr.msk.f32.mxu0 %vm524_vm4, %v5139_v40  ;;  %v1736_v29 = vld [vmem:[%s5722_s16 + $0x30] sm:$0xff]  ;;  %v1739_v35 = vld [vmem:[%s5722_s16 + $0x48] sm:$0xff] }
 0x965   :  { %4521 = vmatprep.subr.bf16.mxu0 %v4520_v63  ;;  %v4532_v32 = vpack.c.bf16 %v1737_v31, %v1736_v29 }
 0x96b   :  { %4175 = vmatmul.mubr.msk.f32.vlgmr.msra.gmra.mrb[14].mxu0 %vm524_vm4, %v5141_v41 }
 0x96c   :  { %4523 = vmatpush3.bf16.msra.mxu0 %v4520_v63 }
 0x96d   :  { %4525 = vmatprep.subr.bf16.mxu0 %v4524_v24 }
 0x970   :  { %4527 = vmatpush3.bf16.msra.mxu0 %v4524_v24 }
 0x971   :  { %4529 = vmatprep.subr.bf16.mxu0 %v4528_v27 }
 0x974   :  { %4531 = vmatpush3.bf16.msra.mxu0 %v4528_v27 }
 0x975   :  { %4533 = vmatprep.subr.bf16.mxu0 %v4532_v32 }
 0x978   :  { %4535 = vmatpush3.bf16.msra.mxu0 %v4532_v32 }
 0xa3e   :  { %v4176_v39 = vpop.f32.mrb[14].mxu0 }
 0xa3f   :  { %v1578_v28 = vadd.f32 %v4176_v39, %v4964_v47  ;;  %v1568_v42 = vpop.f32.mrb[15].mxu0  ;;  %v1740_v39 = vld [vmem:[%s5722_s16 + $0x50] sm:$0xff] }
 0xa40   :  { %v1577_v43 = vadd.f32 %v1568_v42, %v4966_v48 }
 0xa41   :  { %v5196_v44 = vadd.f32 %v1582_v38, %v1578_v28  ;;  %v1741_v28 = vld [vmem:[%s5722_s16 + $0x58] sm:$0xff] }
 0xa42   :  { %v5198_v45 = vadd.f32 %v1582_v38, %v1577_v43  ;;  %v4536_v38 = vpack.c.bf16 %v1739_v35, %v1738_v33  ;;  %v4540_v42 = vpack.c.bf16 %v1741_v28, %v1740_v39  ;;  %v1742_v43 = vld [vmem:[%s5722_s16 + $0x60] sm:$0xff]  ;;  %v3709_v35 = vld [vmem:[%s5714_s8 + $0x48] sm:$0xff]  ;;  %v3710_v39 = vld [vmem:[%s5714_s8 + $0x50] sm:$0xff] }
 0xa43   :  { %v1588_v40 = vsel %vm235_vm2, %v5196_v44, 0.0  ;;  %v3708_v33 = vld [vmem:[%s5714_s8 + $0x40] sm:$0xff]  ;;  %v3711_v28 = vld [vmem:[%s5714_s8 + $0x58] sm:$0xff] }
 0xa44   :  { %1589 = vadd.xlane.f32.xlu0 %v1588_v40  ;;  %v1585_v41 = vsel %vm235_vm2, %v5198_v45, 0.0  ;;  %4537 = vmatprep.subr.bf16.mxu0 %v4536_v38  ;;  %v1743_v40 = vld [vmem:[%s5722_s16 + $0x68] sm:$0xff] }
 0xa45   :  { %1586 = vadd.xlane.f32.xlu1 %v1585_v41  ;;  %4539 = vmatpush3.bf16.msra.mxu0 %v4536_v38  ;;  %v4544_v41 = vpack.c.bf16 %v1743_v40, %v1742_v43  ;;  %v4552_v38 = vpack.c.bf16 %v3709_v35, %v3708_v33  ;;  %v3716_v43 = vld [vmem:[%s5715_s9 + $0x40] sm:$0xff]  ;;  %v3717_v40 = vld [vmem:[%s5715_s9 + $0x48] sm:$0xff] }
 0xa46   :  { %4541 = vmatprep.subr.bf16.mxu0 %v4540_v42 }
 0xa47   :  { %4553 = vmatprep.subr.bf16.mxu1 %v4552_v38 }
 0xa49   :  { %4543 = vmatpush3.bf16.msra.mxu0 %v4540_v42  ;;  %v4556_v42 = vpack.c.bf16 %v3711_v28, %v3710_v39 }
 0xa4a   :  { %4545 = vmatprep.subr.bf16.mxu0 %v4544_v41 }
 0xa4d   :  { %4547 = vmatpush3.bf16.msra.mxu0 %v4544_v41  ;;  %v4560_v41 = vpack.c.bf16 %v3717_v40, %v3716_v43 }
 0xad1   :  { %v1590_v46 = vpop.xlane.xlu0 %1589 }
 0xad2   :  { %v1592_v49 = vmul.f32 0.03125, %v1590_v46  ;;  %v1587_v34 = vpop.xlane.xlu1 %1586  ;;  %v1744_v46 = vld [vmem:[%s5722_s16 + $0x70] sm:$0xff] }
 0xad3   :  { %v1591_v50 = vmul.f32 0.03125, %v1587_v34 }
 0xad4   :  { %v1594_v47 = vsub.f32 %v5196_v44, %v1592_v49  ;;  %v1745_v49 = vld [vmem:[%s5722_s16 + $0x78] sm:$0xff] }
 0xad5   :  { %v1593_v48 = vsub.f32 %v5198_v45, %v1591_v50  ;;  %v4548_v34 = vpack.c.bf16 %v1745_v49, %v1744_v46  ;;  %v1629_v50 = vsub.s32 6, %v5007_v17 }
 0xad6   :  { %v1596_v51 = vmul.f32 %v1594_v47, %v1594_v47 }
 0xad7   :  { %v1595_v52 = vmul.f32 %v1593_v48, %v1593_v48  ;;  %4549 = vmatprep.subr.bf16.mxu0 %v4548_v34 }
 0xad8   :  { %v1600_v53 = vsel %vm235_vm2, %v1596_v51, 0.0  ;;  %4551 = vmatpush3.bf16.msra.mxu0 %v4548_v34 }
 0xad9   :  { %1601 = vadd.xlane.f32.xlu0 %v1600_v53  ;;  %v1597_v55 = vsel %vm235_vm2, %v1595_v52, 0.0  ;;  %4266 = vmatprep.subr.mxu0 %v4795_v36 }
 0xada   :  { %1598 = vadd.xlane.f32.xlu1 %v1597_v55 }
 0xb66   :  { %v1602_v0 = vpop.xlane.xlu0 %1601 }
 0xb67   :  { %v1604_v1 = vmul.f32 0.03125, %v1602_v0  ;;  %v1599_v2 = vpop.xlane.xlu1 %1598 }
 0xb68   :  { %v1603_v3 = vmul.f32 0.03125, %v1599_v2 }
 0xb69   :  { %v1606_v4 = vadd.f32 1e-05, %v1604_v1 }
 0xb6a   :  { %v1605_v5 = vadd.f32 1e-05, %v1603_v3 }
 0xb6b   :  { %4729 = vrsqrt.f32 %v1606_v4 }
 0xb6c   :  { %4731 = vrsqrt.f32 %v1605_v5 }
 0xb75   :  { %v4730_v9 = vpop.eup %4729 }
 0xb76   :  { %v4732_v10 = vpop.eup %4731  ;;  %v1610_v11 = vmul.f32 %v4730_v9, %v1594_v47  ;;  %v1630_v47 = vrot.slane %v5013_v20, %v1629_v50 }
 0xb77   :  { %v1609_v12 = vmul.f32 %v4732_v10, %v1593_v48  ;;  %v1825_v10 = vsub.s32 5, %v5007_v17  ;;  %v3502_v17 = vld [vmem:[%s5711_s5] sm:$0xff] }
 0xb78   :  { %v1616_v14 = vmul.f32 %v1614_v8, %v1610_v11 }
 0xb79   :  { %v1615_v15 = vmul.f32 %v1614_v8, %v1609_v12  ;;  %v1826_v11 = vrot.slane %v5013_v20, %v1825_v10 }
 0xb7a   :  { %v1622_v18 = vadd.f32 %v1620_v13, %v1616_v14 }
 0xb7b   :  { %v1621_v16 = vadd.f32 %v1620_v13, %v1615_v15 }
 0xb7d   :  { %4185 = vmatprep.mubr.msk.f32.mxu1 %vm235_vm2, %v1621_v16 }
 0xb7e   :  { %4186 = vmatmul.mubr.msk.f32.vlgmr.msra.gmra.mrb[16].mxu1 %vm235_vm2, %v1622_v18 }
 0xb7f   :  { %4555 = vmatpush3.bf16.msra.mxu1 %v4552_v38 }
 0xb80   :  { %4557 = vmatprep.subr.bf16.mxu1 %v4556_v42 }
 0xb83   :  { %4559 = vmatpush3.bf16.msra.mxu1 %v4556_v42 }
 0xb84   :  { %4561 = vmatprep.subr.bf16.mxu1 %v4560_v41 }
 0xc51   :  { %v4187_v48 = vpop.f32.mrb[16].mxu1 }
 0xc52   :  { %v1709_v51 = vadd.f32 %v4187_v48, %v1630_v47  ;;  %v1703_v52 = vpop.f32.mrb[17].mxu1 }
 0xc53   :  { %v1704_v53 = vadd.f32 %v1703_v52, %v1630_v47  ;;  %v5324_v52 = vld [vmem:[%s5713_s7 + $0x8] sm:$0xff] }
 0xc54   :  { %v1715_v55 = vmul.f32 0.044715, %v1709_v51  ;;  %v1713_v5 = vmul.f32 0.5, %v1709_v51 }
 0xc55   :  { %v1714_v56 = vmul.f32 0.044715, %v1704_v53  ;;  %v1712_v3 = vmul.f32 0.5, %v1704_v53 }
 0xc56   :  { %v1717_v57 = vmul.f32 %v1715_v55, %v1709_v51 }
 0xc57   :  { %v1716_v58 = vmul.f32 %v1714_v56, %v1704_v53 }
 0xc58   :  { %v1719_v59 = vmul.f32 %v1717_v57, %v1709_v51 }
 0xc59   :  { %v1718_v60 = vmul.f32 %v1716_v58, %v1704_v53  ;;  %v1907_v58 = vrot.slane %v5324_v52, %v271_v21  ;;  %v3724_v21 = vld [vmem:[%s5716_s10 + $0x40] sm:$0xff] }
 0xc5a   :  { %v1721_v61 = vadd.f32 %v1719_v59, %v1709_v51 }
 0xc5b   :  { %v1720_v62 = vadd.f32 %v1718_v60, %v1704_v53  ;;  %v1901_v53 = vrot.slane %v5324_v52, %v265_v19 }
 0xc5c   :  { %v1723_v30 = vmul.f32 0.7978846, %v1721_v61 }
 0xc5d   :  { %v1722_v63 = vmul.f32 0.7978846, %v1720_v62  ;;  %v3718_v62 = vld [vmem:[%s5715_s9 + $0x50] sm:$0xff] }
 0xc5e   :  { %4733 = vtanh.f32 %v1723_v30  ;;  %v3719_v30 = vld [vmem:[%s5715_s9 + $0x58] sm:$0xff] }
 0xc5f   :  { %4735 = vtanh.f32 %v1722_v63 }
 0xc68   :  { %v4734_v0 = vpop.eup %4733 }
 0xc69   :  { %v4736_v1 = vpop.eup %4735  ;;  %v1727_v2 = vadd.f32 1.0, %v4734_v0  ;;  %v4564_v0 = vpack.c.bf16 %v3719_v30, %v3718_v62  ;;  %v3715_v62 = vld [vmem:[%s5714_s8 + $0x78] sm:$0xff] }
 0xc6a   :  { %v1726_v4 = vadd.f32 1.0, %v4736_v1  ;;  %v3725_v1 = vld [vmem:[%s5716_s10 + $0x48] sm:$0xff] }
 0xc6b   :  { %v1729_v9 = vmul.f32 %v1727_v2, %v1713_v5  ;;  %v4568_v2 = vpack.c.bf16 %v3725_v1, %v3724_v21  ;;  %v3722_v1 = vld [vmem:[%s5715_s9 + $0x70] sm:$0xff] }
 0xc6c   :  { %v1728_v8 = vmul.f32 %v1726_v4, %v1712_v3  ;;  %v3726_v3 = vld [vmem:[%s5716_s10 + $0x50] sm:$0xff]  ;;  %v3727_v4 = vld [vmem:[%s5716_s10 + $0x58] sm:$0xff] }
 0xc6d   :  { %v4572_v5 = vpack.c.bf16 %v3727_v4, %v3726_v3  ;;  %v3728_v3 = vld [vmem:[%s5716_s10 + $0x60] sm:$0xff]  ;;  %v3729_v4 = vld [vmem:[%s5716_s10 + $0x68] sm:$0xff] }
 0xc6e   :  { %4220 = vmatprep.mubr.f32.mxu0 %v1728_v8 }
 0xc6f   :  { %4221 = vmatmul.mubr.f32.vlgmr.msra.gmra.mrb[16].mxu0 %v1729_v9 }
 0xc70   :  { %4268 = vmatprep.mubr.msk.f32.mxu0 %vm4796_vm3, %v4795_v36 }
 0xd42   :  { %v4222_v12 = vpop.f32.mrb[16].mxu0 }
 0xd43   :  { %v1822_v13 = vadd.f32 %v4222_v12, %v5196_v44  ;;  %v1812_v14 = vpop.f32.mrb[17].mxu0 }
 0xd44   :  { %v1821_v15 = vadd.f32 %v1812_v14, %v5198_v45  ;;  %v3742_v14 = vld [vmem:[%s5717_s11 + $0x2] ss:$0 sm:$0xff] }
 0xd45   :  { %v5291_v16 = vadd.f32 %v1826_v11, %v1822_v13 }
 0xd46   :  { %v5293_v18 = vadd.f32 %v1826_v11, %v1821_v15  ;;  %v3745_v11 = vld [vmem:[%s5718_s12 + $0x2] ss:$0 sm:$0xff] }
 0xd47   :  { %v1875_v22 = vsel %vm235_vm2, %v5291_v16, 0.0 }
 0xd48   :  { %1876 = vadd.xlane.f32.xlu0 %v1875_v22  ;;  %v1872_v23 = vsel %vm235_vm2, %v5293_v18, 0.0 }
 0xd49   :  { %1873 = vadd.xlane.f32.xlu1 %v1872_v23 }
 0xdd5   :  { %v1877_v24 = vpop.xlane.xlu0 %1876 }
 0xdd6   :  { %v1879_v20 = vmul.f32 0.03125, %v1877_v24  ;;  %v1874_v25 = vpop.xlane.xlu1 %1873  ;;  %v3748_v24 = vld [vmem:[%s5719_s13 + $0x2] ss:$0 sm:$0xff] }
 0xdd7   :  { %v1878_v26 = vmul.f32 0.03125, %v1874_v25 }
 0xdd8   :  { %v1881_v44 = vsub.f32 %v5291_v16, %v1879_v20 }
 0xdd9   :  { %v1880_v45 = vsub.f32 %v5293_v18, %v1878_v26 }
 0xdda   :  { %v1883_v27 = vmul.f32 %v1881_v44, %v1881_v44 }
 0xddb   :  { %v1882_v29 = vmul.f32 %v1880_v45, %v1880_v45 }
 0xddc   :  { %v1887_v31 = vsel %vm235_vm2, %v1883_v27, 0.0 }
 0xddd   :  { %1888 = vadd.xlane.f32.xlu0 %v1887_v31  ;;  %v1884_v32 = vsel %vm235_vm2, %v1882_v29, 0.0 }
 0xdde   :  { %1885 = vadd.xlane.f32.xlu1 %v1884_v32 }
 0xe6a   :  { %v1889_v46 = vpop.xlane.xlu0 %1888 }
 0xe6b   :  { %v1891_v49 = vmul.f32 0.03125, %v1889_v46  ;;  %v1886_v34 = vpop.xlane.xlu1 %1885 }
 0xe6c   :  { %v1890_v47 = vmul.f32 0.03125, %v1886_v34 }
 0xe6d   :  { %v1893_v48 = vadd.f32 1e-05, %v1891_v49 }
 0xe6e   :  { %v1892_v51 = vadd.f32 1e-05, %v1890_v47 }
 0xe6f   :  { %4737 = vrsqrt.f32 %v1893_v48 }
 0xe70   :  { %4739 = vrsqrt.f32 %v1892_v51  ;;  %v3712_v51 = vld [vmem:[%s5714_s8 + $0x60] sm:$0xff] }
 0xe79   :  { %v4738_v55 = vpop.eup %4737 }
 0xe7a   :  { %v4740_v56 = vpop.eup %4739  ;;  %v1897_v57 = vmul.f32 %v4738_v55, %v1881_v44 }
 0xe7b   :  { %v1896_v59 = vmul.f32 %v4740_v56, %v1880_v45  ;;  %v3720_v56 = vld [vmem:[%s5715_s9 + $0x60] sm:$0xff] }
 0xe7c   :  { %v1903_v60 = vmul.f32 %v1901_v53, %v1897_v57  ;;  %v3721_v57 = vld [vmem:[%s5715_s9 + $0x68] sm:$0xff] }
 0xe7d   :  { %v1902_v61 = vmul.f32 %v1901_v53, %v1896_v59  ;;  %v3713_v53 = vld [vmem:[%s5714_s8 + $0x68] sm:$0xff] }
 0xe7e   :  { %v5340_v19 = vadd.f32 %v1907_v58, %v1903_v60  ;;  %v4576_v55 = vpack.c.bf16 %v3713_v53, %v3712_v51 }
 0xe7f   :  { %v5338_v63 = vadd.f32 %v1907_v58, %v1902_v61  ;;  %v4584_v58 = vpack.c.bf16 %v3721_v57, %v3720_v56  ;;  %v3714_v61 = vld [vmem:[%s5714_s8 + $0x70] sm:$0xff] }
 0xe80   :  { %v4580_v21 = vpack.c.bf16 %v3715_v62, %v3714_v61 }
 0xe81   :  { %4231 = vmatprep.mubr.msk.f32.mxu1 %vm235_vm2, %v5338_v63 }
 0xe82   :  { %4232 = vmatmul.mubr.msk.f32.vlgmr.msra.gmra.mrb[18].mxu1 %vm235_vm2, %v5340_v19 }
 0xe83   :  { %4563 = vmatpush3.bf16.msra.mxu1 %v4560_v41  ;;  %4242 = vmatprep.mubr.msk.f32.mxu1 %vm235_vm2, %v5338_v63 }
 0xe84   :  { %4565 = vmatprep.subr.bf16.mxu1 %v4564_v0 }
 0xe87   :  { %4567 = vmatpush3.bf16.msra.mxu1 %v4564_v0 }
 0xe88   :  { %4569 = vmatprep.subr.bf16.mxu1 %v4568_v2 }
 0xe8a   :  { %4243 = vmatmul.mubr.msk.f32.vlgmr.msra.gmra.mrb[20].mxu1 %vm235_vm2, %v5340_v19 }
 0xe8b   :  { %4571 = vmatpush3.bf16.msra.mxu1 %v4568_v2  ;;  %4253 = vmatprep.mubr.msk.f32.mxu1 %vm235_vm2, %v5338_v63  ;;  %v3723_v2 = vld [vmem:[%s5715_s9 + $0x78] sm:$0xff] }
 0xe8c   :  { %4573 = vmatprep.subr.bf16.mxu1 %v4572_v5 }
 0xe8f   :  { %4575 = vmatpush3.bf16.msra.mxu1 %v4572_v5 }
 0xe90   :  { %4256 = vmatprep.subr.mxu1 %v4795_v36 }
 0xe92   :  { %4254 = vmatmul.mubr.msk.f32.vlgmr.msra.gmra.mrb[22].mxu1 %vm235_vm2, %v5340_v19 }
 0xe93   :  { %4258 = vmatprep.mubr.msk.f32.mxu1 %vm4796_vm3, %v4795_v36 }
 0xf55   :  { %v4233_v8 = vpop.f32.mrb[18].mxu1 }
 0xf56   :  { %v1988_v9 = vpop.f32.mrb[19].mxu1  ;;  %v1994_v25 = vadd.f32 %v4233_v8, %v3742_v14 }
 0xf57   :  { %v1989_v22 = vadd.f32 %v3742_v14, %v1988_v9  ;;  %v4588_v9 = vpack.c.bf16 %v3723_v2, %v3722_v1  ;;  %v3741_v1 = vld [vmem:[%s5720_s14 + $0x38] sm:$0xff] }
 0xf5d   :  { %v4244_v12 = vpop.f32.mrb[20].mxu1 }
 0xf5e   :  { %v2069_v13 = vpop.f32.mrb[21].mxu1  ;;  %v2075_v23 = vadd.f32 %v4244_v12, %v3745_v11  ;;  %v3730_v12 = vld [vmem:[%s5716_s10 + $0x70] sm:$0xff] }
 0xf5f   :  { %v2070_v15 = vadd.f32 %v3745_v11, %v2069_v13  ;;  %v4592_v11 = vpack.c.bf16 %v3729_v4, %v3728_v3  ;;  %v3731_v13 = vld [vmem:[%s5716_s10 + $0x78] sm:$0xff]  ;;  %v3738_v3 = vld [vmem:[%s5720_s14 + $0x20] sm:$0xff]  ;;  %v3739_v4 = vld [vmem:[%s5720_s14 + $0x28] sm:$0xff] }
 0xf60   :  { %v4596_v14 = vpack.c.bf16 %v3731_v13, %v3730_v12  ;;  %v3213_v13 = vrot.slane %v5324_v52, %v1581_v37 }
 0xf61   :  { %4257 = vmatpush3.xpose.msk.msra.mxu1 %vm524_vm4, %v2070_v15 }
 0xf62   :  { %4261 = vmatprep.subr.mxu1 %v4795_v36 }
 0xf64   :  { %4259 = vmatmul.mubr.msk.f32.vlgmr.msra.gmra.mrb[24].mxu1 %vm524_vm4, %v1989_v22 }
 0xf65   :  { %v4255_v20 = vpop.f32.mrb[22].mxu1  ;;  %4262 = vmatpush3.xpose.msk.msra.mxu1 %vm524_vm4, %v2075_v23  ;;  %4263 = vmatprep.mubr.msk.f32.mxu1 %vm4796_vm3, %v4795_v36 }
 0xf66   :  { %v2156_v26 = vadd.f32 %v4255_v20, %v3748_v24  ;;  %v2150_v44 = vpop.f32.mrb[23].mxu1  ;;  %4271 = vmatprep.subr.mxu1 %v4795_v36 }
 0xf67   :  { %v2151_v45 = vadd.f32 %v3748_v24, %v2150_v44 }
 0xf68   :  { %4264 = vmatmul.mubr.msk.f32.vlgmr.msra.gmra.mrb[26].mxu1 %vm524_vm4, %v1994_v25  ;;  %v3760_v25 = vld [vmem:[%s5718_s12 + $0x3] ss:$0 sm:$0xff] }
 0xf69   :  { %4267 = vmatpush3.msra.mxu0 %v2151_v45  ;;  %4272 = vmatpush3.msra.mxu1 %v2156_v26 }
 0xf6a   :  { %4273 = vmatprep.mubr.msk.f32.mxu1 %vm4796_vm3, %v4795_v36  ;;  %4577 = vmatprep.subr.bf16.mxu0 %v4576_v55 }
 0xf6b   :  { %4585 = vmatprep.subr.bf16.mxu1 %v4584_v58 }
0x1037   :  { %v2231_v27 = vpop.f32.mrb[24].mxu1 }
0x1038   :  { %v2311_v29 = vsel %vm5071_vm5, %v2231_v27, -1e+09  ;;  %v4260_v31 = vpop.f32.mrb[25].mxu1  ;;  %v3763_v27 = vld [vmem:[%s5719_s13 + $0x3] ss:$0 sm:$0xff] }
0x1039   :  { %v2313_v32 = vsel %vm681_vm6, %v2311_v29, -inf }
0x103a   :  { %2314 = vmax.xlane.f32.xlu0 %v2313_v32 }
0x103b   :  { %v2307_v33 = vpop.f32.mrb[26].mxu1 }
0x103c   :  { %v2312_v35 = vsel %vm5071_vm5, %v2307_v33, -1e+09  ;;  %v4265_v38 = vpop.f32.mrb[27].mxu1 }
0x103d   :  { %v2316_v39 = vsel %vm681_vm6, %v2312_v35, -inf }
0x103e   :  { %2317 = vmax.xlane.f32.xlu1 %v2316_v39 }
0x10c7   :  { %v2315_v28 = vpop.xlane.xlu0 %2314 }
0x10c8   :  { %v2319_v42 = vsub.f32 %v2311_v29, %v2315_v28 }
0x10ca   :  { %v2321_v43 = vmul.f32 1.442695, %v2319_v42 }
0x10cb   :  { %v2318_v40 = vpop.xlane.xlu1 %2317 }
0x10cc   :  { %4741 = vpow2.f32 %v2321_v43  ;;  %v2320_v41 = vsub.f32 %v2312_v35, %v2318_v40 }
0x10ce   :  { %v2323_v46 = vmul.f32 1.442695, %v2320_v41 }
0x10d0   :  { %4743 = vpow2.f32 %v2323_v46 }
0x10d6   :  { %v4742_v49 = vpop.eup %4741 }
0x10d7   :  { %v2325_v34 = vsel %vm681_vm6, %v4742_v49, 0.0 }
0x10d8   :  { %2326 = vadd.xlane.f32.xlu0 %v2325_v34 }
0x10da   :  { %v4744_v47 = vpop.eup %4743 }
0x10db   :  { %v2328_v48 = vsel %vm681_vm6, %v4744_v47, 0.0 }
0x10dc   :  { %2329 = vadd.xlane.f32.xlu1 %v2328_v48 }
0x1165   :  { %v2327_v59 = vpop.xlane.xlu0 %2326 }
0x1166   :  { %4745 = vrcp.f32 %v2327_v59 }
0x1169   :  { %v2330_v60 = vpop.xlane.xlu1 %2329 }
0x116a   :  { %4747 = vrcp.f32 %v2330_v60 }
0x1170   :  { %v4746_v30 = vpop.eup %4745 }
0x1171   :  { %v2333_v0 = vmul.f32 %v4746_v30, %v4742_v49 }
0x1173   :  { %4269 = vmatmul.mubr.msk.f32.vlgmr.msra.gmra.mrb[18].mxu0 %vm681_vm6, %v2333_v0 }
0x1174   :  { %v4748_v5 = vpop.eup %4747  ;;  %4579 = vmatpush3.bf16.msra.mxu0 %v4576_v55  ;;  %4284 = vmatprep.mubr.msk.f32.mxu0 %vm235_vm2, %v5338_v63 }
0x1175   :  { %v2334_v8 = vmul.f32 %v4748_v5, %v4744_v47  ;;  %4581 = vmatprep.subr.bf16.mxu0 %v4580_v21  ;;  %v4604_v5 = vpack.c.bf16 %v3739_v4, %v3738_v3  ;;  %v3790_v3 = vld [vmem:[%s5722_s16 + $0xc0] sm:$0xff]  ;;  %v3791_v4 = vld [vmem:[%s5722_s16 + $0xc8] sm:$0xff] }
0x1177   :  { %4274 = vmatmul.mubr.msk.f32.vlgmr.msra.gmra.mrb[28].mxu1 %vm681_vm6, %v2334_v8 }
0x1178   :  { %4583 = vmatpush3.bf16.msra.mxu0 %v4580_v21  ;;  %4587 = vmatpush3.bf16.msra.mxu1 %v4584_v58  ;;  %v3740_v21 = vld [vmem:[%s5720_s14 + $0x30] sm:$0xff] }
0x1179   :  { %4295 = vmatprep.mubr.msk.f32.mxu1 %vm235_vm2, %v5338_v63  ;;  %4589 = vmatprep.subr.bf16.mxu1 %v4588_v9  ;;  %v4600_v2 = vpack.c.bf16 %v3741_v1, %v3740_v21  ;;  %v3788_v21 = vld [vmem:[%s5722_s16 + $0xb0] sm:$0xff]  ;;  %v3789_v1 = vld [vmem:[%s5722_s16 + $0xb8] sm:$0xff] }
0x117a   :  { %4593 = vmatprep.subr.bf16.mxu0 %v4592_v11 }
0x117b   :  { %4285 = vmatmul.mubr.msk.f32.vlgmr.msra.gmra.mrb[20].mxu0 %vm235_vm2, %v5340_v19 }
0x117c   :  { %4591 = vmatpush3.bf16.msra.mxu1 %v4588_v9  ;;  %4595 = vmatpush3.bf16.msra.mxu0 %v4592_v11 }
0x117d   :  { %4306 = vmatprep.mubr.msk.f32.mxu0 %vm235_vm2, %v5338_v63  ;;  %4597 = vmatprep.subr.bf16.mxu0 %v4596_v14 }
0x117e   :  { %4309 = vmatprep.subr.mxu1 %v4795_v36 }
0x117f   :  { %4296 = vmatmul.mubr.msk.f32.vlgmr.msra.gmra.mrb[30].mxu1 %vm235_vm2, %v5340_v19 }
0x1180   :  { %4599 = vmatpush3.bf16.msra.mxu0 %v4596_v14  ;;  %4311 = vmatprep.mubr.msk.f32.mxu1 %vm4796_vm3, %v4795_v36 }
0x1181   :  { %4319 = vmatprep.subr.mxu0 %v4795_v36 }
0x1183   :  { %4307 = vmatmul.mubr.msk.f32.vlgmr.msra.gmra.mrb[22].mxu0 %vm235_vm2, %v5340_v19  ;;  %v3757_v19 = vld [vmem:[%s5717_s11 + $0x3] ss:$0 sm:$0xff]  ;;  %s4797_s11 = smov [#allocation2]  }
0x1184   :  { %4321 = vmatprep.mubr.msk.f32.mxu0 %vm4796_vm3, %v4795_v36  ;;  %s3654_s12 = sshll.u32 %s4797_s11, 4  ;;  %s3655_s12 = int_to_ptr.vmem [resolvable:$true] %s3654_s12 }
0x1185   :  { %s4769_s13 = scalar_lea.vmem %s3655_s12, 256  ;;  %p4774_p1 = scmp.lt.s32.totalorder %s3655_s12, %s3655_s12 }
0x1186   :  { %p4770_p0 = scmp.ne.s32.totalorder %s3655_s12, %s4769_s13  ;;  %p4775_p2 = scmp.lt.s32.totalorder %s4769_s13, %s4769_s13 }
0x1188   :  { %p4776_p3 = por %p4775_p2, %p4774_p1 }
0x118a   :  { %p4777_p4 = pnand %p4776_p3, %p4770_p0 }
0x1246   :  { %v5452_v15 = vpop.f32.mrb[18].mxu0 }
0x1247   :  { %v4270_v63 = vpop.f32.mrb[19].mxu0 }
0x124a   :  { %v5454_v22 = vpop.f32.mrb[28].mxu1 }
0x124b   :  { %v4275_v23 = vpop.f32.mrb[29].mxu1 }
0x124e   :  { %v4286_v24 = vpop.f32.mrb[20].mxu0 }
0x124f   :  { %v2553_v20 = vpop.f32.mrb[21].mxu0  ;;  %v2559_v38 = vadd.f32 %v4286_v24, %v3757_v19 }
0x1250   :  { %v2554_v31 = vadd.f32 %v3757_v19, %v2553_v20 }
0x1252   :  { %v4297_v26 = vpop.f32.mrb[30].mxu1 }
0x1253   :  { %v2634_v44 = vpop.f32.mrb[31].mxu1  ;;  %v2640_v33 = vadd.f32 %v4297_v26, %v3760_v25 }
0x1254   :  { %v2635_v45 = vadd.f32 %v3760_v25, %v2634_v44 }
0x1256   :  { %v4308_v29 = vpop.f32.mrb[22].mxu0  ;;  %4310 = vmatpush3.xpose.msk.msra.mxu1 %vm524_vm4, %v2635_v45 }
0x1257   :  { %v2715_v32 = vpop.f32.mrb[23].mxu0  ;;  %4314 = vmatprep.subr.mxu1 %v4795_v36  ;;  %v2721_v39 = vadd.f32 %v4308_v29, %v3763_v27 }
0x1258   :  { %v2716_v35 = vadd.f32 %v3763_v27, %v2715_v32  ;;  %v3776_v32 = vld [vmem:[%s5721_s15 + $0x20] sm:$0xff] }
0x1259   :  { %4312 = vmatmul.mubr.msk.f32.vlgmr.msra.gmra.mrb[32].mxu1 %vm524_vm4, %v2554_v31 }
0x125a   :  { %4315 = vmatpush3.xpose.msk.msra.mxu1 %vm524_vm4, %v2640_v33  ;;  %4320 = vmatpush3.msra.mxu0 %v2716_v35  ;;  %v3777_v33 = vld [vmem:[%s5721_s15 + $0x28] sm:$0xff] }
0x125b   :  { %4316 = vmatprep.mubr.msk.f32.mxu1 %vm4796_vm3, %v4795_v36  ;;  %4324 = vmatprep.subr.mxu1 %v4795_v36  ;;  %v4608_v35 = vpack.c.bf16 %v3777_v33, %v3776_v32 }
0x125c   :  { %4601 = vmatprep.subr.bf16.mxu0 %v4600_v2 }
0x125d   :  { %4317 = vmatmul.mubr.msk.f32.vlgmr.msra.gmra.mrb[34].mxu1 %vm524_vm4, %v2559_v38  ;;  %v3778_v38 = vld [vmem:[%s5721_s15 + $0x30] sm:$0xff] }
0x125e   :  { %4325 = vmatpush3.msra.mxu1 %v2721_v39  ;;  %4326 = vmatprep.mubr.msk.f32.mxu1 %vm4796_vm3, %v4795_v36  ;;  %v3779_v39 = vld [vmem:[%s5721_s15 + $0x38] sm:$0xff] }
0x125f   :  { %4609 = vmatprep.subr.bf16.mxu1 %v4608_v35 }
0x132c   :  { %v2796_v28 = vpop.f32.mrb[32].mxu1 }
0x132d   :  { %v2876_v42 = vsel %vm5071_vm5, %v2796_v28, -1e+09  ;;  %v4313_v43 = vpop.f32.mrb[33].mxu1  ;;  %v4612_v28 = vpack.c.bf16 %v3779_v39, %v3778_v38 }
0x132e   :  { %v2878_v40 = vsel %vm681_vm6, %v2876_v42, -inf  ;;  %v3783_v43 = vld [vmem:[%s5722_s16 + $0x88] sm:$0xff] }
0x132f   :  { %2879 = vmax.xlane.f32.xlu1 %v2878_v40 }
0x1330   :  { %v2872_v41 = vpop.f32.mrb[34].mxu1 }
0x1331   :  { %v2877_v46 = vsel %vm5071_vm5, %v2872_v41, -1e+09  ;;  %v4318_v49 = vpop.f32.mrb[35].mxu1 }
0x1332   :  { %v2881_v34 = vsel %vm681_vm6, %v2877_v46, -inf }
0x1333   :  { %2882 = vmax.xlane.f32.xlu0 %v2881_v34 }
0x13bc   :  { %v2880_v47 = vpop.xlane.xlu1 %2879 }
0x13bd   :  { %v2884_v48 = vsub.f32 %v2876_v42, %v2880_v47  ;;  %v3782_v42 = vld [vmem:[%s5722_s16 + $0x80] sm:$0xff] }
0x13be   :  { %v4616_v40 = vpack.c.bf16 %v3783_v43, %v3782_v42 }
0x13bf   :  { %v2886_v51 = vmul.f32 1.442695, %v2884_v48 }
0x13c0   :  { %v2883_v36 = vpop.xlane.xlu0 %2882 }
0x13c1   :  { %4749 = vpow2.f32 %v2886_v51  ;;  %v2885_v53 = vsub.f32 %v2877_v46, %v2883_v36  ;;  %v3245_v51 = vrot.slane %v5324_v52, %v1613_v6  ;;  %v3784_v6 = vld [vmem:[%s5722_s16 + $0x90] sm:$0xff] }
0x13c3   :  { %v2888_v55 = vmul.f32 1.442695, %v2885_v53 }
0x13c5   :  { %4751 = vpow2.f32 %v2888_v55 }
0x13cb   :  { %v4750_v56 = vpop.eup %4749 }
0x13cc   :  { %v2890_v57 = vsel %vm681_vm6, %v4750_v56, 0.0 }
0x13cd   :  { %2891 = vadd.xlane.f32.xlu1 %v2890_v57  ;;  %v3251_v57 = vrot.slane %v5324_v52, %v1619_v7  ;;  %v3786_v7 = vld [vmem:[%s5722_s16 + $0xa0] sm:$0xff] }
0x13cf   :  { %v4752_v58 = vpop.eup %4751 }
0x13d0   :  { %v2893_v54 = vsel %vm681_vm6, %v4752_v58, 0.0 }
0x13d1   :  { %2894 = vadd.xlane.f32.xlu0 %v2893_v54 }
0x145a   :  { %v2892_v59 = vpop.xlane.xlu1 %2891 }
0x145b   :  { %4753 = vrcp.f32 %v2892_v59 }
0x145e   :  { %v2895_v60 = vpop.xlane.xlu0 %2894 }
0x145f   :  { %4755 = vrcp.f32 %v2895_v60 }
0x1465   :  { %v4754_v61 = vpop.eup %4753 }
0x1466   :  { %v2898_v62 = vmul.f32 %v4754_v61, %v4750_v56  ;;  %v3785_v61 = vld [vmem:[%s5722_s16 + $0x98] sm:$0xff] }
0x1468   :  { %4322 = vmatmul.mubr.msk.f32.vlgmr.msra.gmra.mrb[24].mxu0 %vm681_vm6, %v2898_v62  ;;  %v4620_v62 = vpack.c.bf16 %v3785_v61, %v3784_v6  ;;  %v3509_v6 = vld [vmem:[%s5711_s5 + $0x38] sm:$0xff] }
0x1469   :  { %v4756_v30 = vpop.eup %4755  ;;  %4603 = vmatpush3.bf16.msra.mxu0 %v4600_v2  ;;  %v4628_v2 = vpack.c.bf16 %v3789_v1, %v3788_v21  ;;  %v3513_v21 = vld [vmem:[%s5711_s5 + $0x58] sm:$0xff] }
0x146a   :  { %v2899_v0 = vmul.f32 %v4756_v30, %v4752_v58  ;;  %4605 = vmatprep.subr.bf16.mxu0 %v4604_v5  ;;  %v3787_v30 = vld [vmem:[%s5722_s16 + $0xa8] sm:$0xff] }
0x146c   :  { %4327 = vmatmul.mubr.msk.f32.vlgmr.msra.gmra.mrb[36].mxu1 %vm681_vm6, %v2899_v0  ;;  %v4624_v0 = vpack.c.bf16 %v3787_v30, %v3786_v7  ;;  %v3511_v7 = vld [vmem:[%s5711_s5 + $0x48] sm:$0xff] }
0x146d   :  { %4611 = vmatpush3.bf16.msra.mxu1 %v4608_v35 }
0x146e   :  { %4613 = vmatprep.subr.bf16.mxu1 %v4612_v28 }
0x1471   :  { %4615 = vmatpush3.bf16.msra.mxu1 %v4612_v28 }
0x153b   :  { %v2969_v8 = vpop.f32.mrb[24].mxu0 }
0x153c   :  { %v4323_v9 = vpop.f32.mrb[25].mxu0  ;;  %4333 = vmatprep.mubr.msk.f32.mxu0 %vm524_vm4, %v2969_v8  ;;  %v3792_v8 = vld [vmem:[%s5722_s16 + $0xd0] sm:$0xff] }
0x153d   :  { %v3793_v9 = vld [vmem:[%s5722_s16 + $0xd8] sm:$0xff] }
0x153f   :  { %v3042_v11 = vpop.f32.mrb[36].mxu1 }
0x1540   :  { %v4328_v12 = vpop.f32.mrb[37].mxu1  ;;  %4334 = vmatmul.mubr.msk.f32.vlgmr.msra.gmra.mrb[26].mxu0 %vm524_vm4, %v3042_v11  ;;  %v4636_v11 = vpack.c.bf16 %v3793_v9, %v3792_v8 }
0x1541   :  { %4607 = vmatpush3.bf16.msra.mxu0 %v4604_v5  ;;  %4340 = vmatprep.mubr.msk.f32.mxu0 %vm524_vm4, %v5452_v15  ;;  %v4632_v5 = vpack.c.bf16 %v3791_v4, %v3790_v3  ;;  %v3794_v12 = vld [vmem:[%s5722_s16 + $0xe0] sm:$0xff] }
0x1542   :  { %4617 = vmatprep.subr.bf16.mxu0 %v4616_v40 }
0x1548   :  { %4341 = vmatmul.mubr.msk.f32.vlgmr.msra.gmra.mrb[26].mxu0 %vm524_vm4, %v5454_v22 }
0x1549   :  { %4619 = vmatpush3.bf16.msra.mxu0 %v4616_v40 }
0x154a   :  { %4621 = vmatprep.subr.bf16.mxu0 %v4620_v62 }
0x154d   :  { %4623 = vmatpush3.bf16.msra.mxu0 %v4620_v62  ;;  %v3510_v62 = vld [vmem:[%s5711_s5 + $0x40] sm:$0xff] }
0x154e   :  { %4625 = vmatprep.subr.bf16.mxu0 %v4624_v0  ;;  %v4672_v30 = vpack.c.bf16 %v3511_v7, %v3510_v62 }
0x1551   :  { %4627 = vmatpush3.bf16.msra.mxu0 %v4624_v0  ;;  %v3512_v0 = vld [vmem:[%s5711_s5 + $0x50] sm:$0xff] }
0x1552   :  { %4629 = vmatprep.subr.bf16.mxu0 %v4628_v2  ;;  %v4678_v1 = vpack.c.bf16 %v3513_v21, %v3512_v0 }
0x1555   :  { %4631 = vmatpush3.bf16.msra.mxu0 %v4628_v2 }
0x1556   :  { %4633 = vmatprep.subr.bf16.mxu0 %v4632_v5 }
0x1559   :  { %4635 = vmatpush3.bf16.msra.mxu0 %v4632_v5 }
0x155a   :  { %4637 = vmatprep.subr.bf16.mxu0 %v4636_v11 }
0x155d   :  { %4639 = vmatpush3.bf16.msra.mxu0 %v4636_v11 }
0x161b   :  { %v4342_v14 = vpop.f32.mrb[26].mxu0 }
0x161c   :  { %v3209_v63 = vadd.f32 %v4342_v14, %v5291_v16  ;;  %v3199_v23 = vpop.f32.mrb[27].mxu0 }
0x161d   :  { %v3208_v24 = vadd.f32 %v3199_v23, %v5293_v18  ;;  %v3797_v23 = vld [vmem:[%s5722_s16 + $0xf8] sm:$0xff] }
0x161e   :  { %v5508_v20 = vadd.f32 %v3213_v13, %v3209_v63  ;;  %v3796_v63 = vld [vmem:[%s5722_s16 + $0xf0] sm:$0xff] }
0x161f   :  { %v5510_v25 = vadd.f32 %v3213_v13, %v3208_v24  ;;  %v3795_v13 = vld [vmem:[%s5722_s16 + $0xe8] sm:$0xff]  ;;  %v4644_v24 = vpack.c.bf16 %v3797_v23, %v3796_v63  ;;  %v3514_v63 = vld [vmem:[%s5711_s5 + $0x60] sm:$0xff] }
0x1620   :  { %v3219_v15 = vsel %vm235_vm2, %v5508_v20, 0.0  ;;  %v4640_v14 = vpack.c.bf16 %v3795_v13, %v3794_v12  ;;  %v3515_v23 = vld [vmem:[%s5711_s5 + $0x68] sm:$0xff] }
0x1621   :  { %3220 = vadd.xlane.f32.xlu0 %v3219_v15  ;;  %v3216_v22 = vsel %vm235_vm2, %v5510_v25, 0.0  ;;  %v3262_v15 = vrot.slane %v5324_v52, %v1629_v50 }
0x1622   :  { %3217 = vadd.xlane.f32.xlu1 %v3216_v22  ;;  %4641 = vmatprep.subr.bf16.mxu0 %v4640_v14 }
0x1623   :  { %4643 = vmatpush3.bf16.msra.mxu0 %v4640_v14 }
0x1624   :  { %4645 = vmatprep.subr.bf16.mxu0 %v4644_v24 }
0x1627   :  { %4647 = vmatpush3.bf16.msra.mxu0 %v4644_v24  ;;  %v4684_v24 = vpack.c.bf16 %v3515_v23, %v3514_v63 }
0x16ae   :  { %v3221_v26 = vpop.xlane.xlu0 %3220 }
0x16af   :  { %v3223_v37 = vmul.f32 0.03125, %v3221_v26  ;;  %v3218_v44 = vpop.xlane.xlu1 %3217 }
0x16b0   :  { %v3222_v19 = vmul.f32 0.03125, %v3218_v44 }
0x16b1   :  { %v3225_v16 = vsub.f32 %v5508_v20, %v3223_v37 }
0x16b2   :  { %v3224_v18 = vsub.f32 %v5510_v25, %v3222_v19 }
0x16b3   :  { %v3227_v45 = vmul.f32 %v3225_v16, %v3225_v16 }
0x16b4   :  { %v3226_v27 = vmul.f32 %v3224_v18, %v3224_v18 }
0x16b5   :  { %v3231_v29 = vsel %vm235_vm2, %v3227_v45, 0.0 }
0x16b6   :  { %3232 = vadd.xlane.f32.xlu0 %v3231_v29  ;;  %v3228_v31 = vsel %vm235_vm2, %v3226_v27, 0.0 }
0x16b7   :  { %3229 = vadd.xlane.f32.xlu1 %v3228_v31 }
0x1743   :  { %v3233_v41 = vpop.xlane.xlu0 %3232 }
0x1744   :  { %v3235_v46 = vmul.f32 0.03125, %v3233_v41  ;;  %v3230_v49 = vpop.xlane.xlu1 %3229 }
0x1745   :  { %v3234_v34 = vmul.f32 0.03125, %v3230_v49 }
0x1746   :  { %v3237_v47 = vadd.f32 1e-05, %v3235_v46  ;;  %v3459_v46 = vrot.slane %v5324_v52, %v1825_v10  ;;  %v3503_v10 = vld [vmem:[%s5711_s5 + $0x8] sm:$0xff] }
0x1747   :  { %v3236_v48 = vadd.f32 1e-05, %v3234_v34 }
0x1748   :  { %4757 = vrsqrt.f32 %v3237_v47 }
0x1749   :  { %4759 = vrsqrt.f32 %v3236_v48 }
0x1752   :  { %v4758_v36 = vpop.eup %4757 }
0x1753   :  { %v4760_v53 = vpop.eup %4759  ;;  %v3241_v55 = vmul.f32 %v4758_v36, %v3225_v16 }
0x1754   :  { %v3240_v56 = vmul.f32 %v4760_v53, %v3224_v18 }
0x1755   :  { %v3247_v58 = vmul.f32 %v3245_v51, %v3241_v55 }
0x1756   :  { %v3246_v54 = vmul.f32 %v3245_v51, %v3240_v56  ;;  %v3505_v56 = vld [vmem:[%s5711_s5 + $0x18] sm:$0xff] }
0x1757   :  { %v3253_v60 = vadd.f32 %v3251_v57, %v3247_v58  ;;  %v3506_v58 = vld [vmem:[%s5711_s5 + $0x20] sm:$0xff] }
0x1758   :  { %v3252_v59 = vadd.f32 %v3251_v57, %v3246_v54  ;;  %v3507_v54 = vld [vmem:[%s5711_s5 + $0x28] sm:$0xff] }
0x175a   :  { %4351 = vmatprep.mubr.msk.f32.mxu1 %vm235_vm2, %v3252_v59  ;;  %v4660_v59 = vpack.c.bf16 %v3507_v54, %v3506_v58 }
0x175b   :  { %4352 = vmatmul.mubr.msk.f32.vlgmr.msra.gmra.mrb[38].mxu1 %vm235_vm2, %v3253_v60  ;;  %v3508_v60 = vld [vmem:[%s5711_s5 + $0x30] sm:$0xff] }
0x175c   :  { %v4666_v61 = vpack.c.bf16 %v3509_v6, %v3508_v60 }
0x182e   :  { %v4353_v22 = vpop.f32.mrb[38].mxu1 }
0x182f   :  { %v3341_v26 = vadd.f32 %v4353_v22, %v3262_v15  ;;  %v3335_v37 = vpop.f32.mrb[39].mxu1  ;;  %v3517_v22 = vld [vmem:[%s5711_s5 + $0x78] sm:$0xff] }
0x1830   :  { %v3336_v44 = vadd.f32 %v3335_v37, %v3262_v15  ;;  %v3516_v15 = vld [vmem:[%s5711_s5 + $0x70] sm:$0xff] }
0x1831   :  { %v3347_v19 = vmul.f32 0.044715, %v3341_v26  ;;  %v3345_v43 = vmul.f32 0.5, %v3341_v26 }
0x1832   :  { %v3346_v16 = vmul.f32 0.044715, %v3336_v44  ;;  %v3344_v50 = vmul.f32 0.5, %v3336_v44 }
0x1833   :  { %v3349_v18 = vmul.f32 %v3347_v19, %v3341_v26 }
0x1834   :  { %v3348_v45 = vmul.f32 %v3346_v16, %v3336_v44 }
0x1835   :  { %v3351_v27 = vmul.f32 %v3349_v18, %v3341_v26 }
0x1836   :  { %v3350_v29 = vmul.f32 %v3348_v45, %v3336_v44 }
0x1837   :  { %v3353_v31 = vadd.f32 %v3351_v27, %v3341_v26  ;;  %v4690_v26 = vpack.c.bf16 %v3517_v22, %v3516_v15 }
0x1838   :  { %v3352_v32 = vadd.f32 %v3350_v29, %v3336_v44  ;;  %v3798_v29 = vld [vmem:[%s5712_s6] ss:$0 sm:$0xff] }
0x1839   :  { %v3355_v33 = vmul.f32 0.7978846, %v3353_v31 }
0x183a   :  { %v3354_v35 = vmul.f32 0.7978846, %v3352_v32 }
0x183b   :  { %4761 = vtanh.f32 %v3355_v33 }
0x183c   :  { %4763 = vtanh.f32 %v3354_v35  ;;  %v3799_v35 = vld [vmem:[%s5712_s6 + $0x1] ss:$0 sm:$0xff] }
0x1845   :  { %v4762_v38 = vpop.eup %4761 }
0x1846   :  { %v4764_v39 = vpop.eup %4763  ;;  %v3359_v28 = vadd.f32 1.0, %v4762_v38 }
0x1847   :  { %v3358_v42 = vadd.f32 1.0, %v4764_v39 }
0x1848   :  { %v3361_v41 = vmul.f32 %v3359_v28, %v3345_v43 }
0x1849   :  { %v3360_v40 = vmul.f32 %v3358_v42, %v3344_v50 }
0x184b   :  { %4386 = vmatprep.mubr.f32.mxu0 %v3360_v40 }
0x184c   :  { %4387 = vmatmul.mubr.f32.vlgmr.msra.gmra.mrb[28].mxu0 %v3361_v41 }
0x191f   :  { %v4388_v49 = vpop.f32.mrb[28].mxu0 }
0x1920   :  { %v3455_v34 = vadd.f32 %v4388_v49, %v5508_v20  ;;  %v3445_v47 = vpop.f32.mrb[29].mxu0  ;;  %v4648_v20 = vpack.c.bf16 %v3503_v10, %v3502_v17 }
0x1921   :  { %v3454_v48 = vadd.f32 %v3445_v47, %v5510_v25  ;;  %v3504_v25 = vld [vmem:[%s5711_s5 + $0x10] sm:$0xff] }
0x1922   :  { %v3461_v51 = vadd.f32 %v3459_v46, %v3455_v34  ;;  %v4654_v57 = vpack.c.bf16 %v3505_v56, %v3504_v25  ;;  %4650 = vmatprep.subr.msk.bf16.mxu1 %vm5606_vm7, %v4648_v20 }
0x1923   :  { %v3460_v36 = vadd.f32 %v3459_v46, %v3454_v48  ;;  %4653 = vmatpush3.bf16.xpose.msk.msra.mxu1 %vm5606_vm7, %v4648_v20 }
0x1924   :  { %v3467_v53 = vsel %vm235_vm2, %v3461_v51, 0.0  ;;  %4656 = vmatprep.subr.msk.bf16.mxu1 %vm5606_vm7, %v4654_v57 }
0x1925   :  { %3468 = vadd.xlane.f32.xlu0 %v3467_v53  ;;  %v3464_v55 = vsel %vm235_vm2, %v3460_v36, 0.0 }
0x1926   :  { %3465 = vadd.xlane.f32.xlu1 %v3464_v55 }
0x192b   :  { %4659 = vmatpush3.bf16.xpose.msk.msra.mxu1 %vm5606_vm7, %v4654_v57 }
0x192c   :  { %4662 = vmatprep.subr.msk.bf16.mxu1 %vm5606_vm7, %v4660_v59 }
0x1933   :  { %4665 = vmatpush3.bf16.xpose.msk.msra.mxu1 %vm5606_vm7, %v4660_v59 }
0x1934   :  { %4668 = vmatprep.subr.msk.bf16.mxu1 %vm5606_vm7, %v4666_v61 }
0x193b   :  { %4671 = vmatpush3.bf16.xpose.msk.msra.mxu1 %vm5606_vm7, %v4666_v61 }
0x193c   :  { %4674 = vmatprep.subr.msk.bf16.mxu1 %vm5606_vm7, %v4672_v30 }
0x1943   :  { %4677 = vmatpush3.bf16.xpose.msk.msra.mxu1 %vm5606_vm7, %v4672_v30 }
0x1944   :  { %4680 = vmatprep.subr.msk.bf16.mxu1 %vm5606_vm7, %v4678_v1 }
0x194b   :  { %4683 = vmatpush3.bf16.xpose.msk.msra.mxu1 %vm5606_vm7, %v4678_v1 }
0x194c   :  { %4686 = vmatprep.subr.msk.bf16.mxu1 %vm5606_vm7, %v4684_v24 }
0x1953   :  { %4689 = vmatpush3.bf16.xpose.msk.msra.mxu1 %vm5606_vm7, %v4684_v24 }
0x1954   :  { %4692 = vmatprep.subr.msk.bf16.mxu1 %vm5606_vm7, %v4690_v26 }
0x195b   :  { %4695 = vmatpush3.bf16.xpose.msk.msra.mxu1 %vm5606_vm7, %v4690_v26 }
0x19b2   :  { %v3469_v2 = vpop.xlane.xlu0 %3468 }
0x19b3   :  { %v3471_v3 = vmul.f32 0.03125, %v3469_v2  ;;  %v3466_v4 = vpop.xlane.xlu1 %3465 }
0x19b4   :  { %v3470_v5 = vmul.f32 0.03125, %v3466_v4 }
0x19b5   :  { %v3473_v8 = vsub.f32 %v3461_v51, %v3471_v3 }
0x19b6   :  { %v3472_v9 = vsub.f32 %v3460_v36, %v3470_v5 }
0x19b7   :  { %v3475_v11 = vmul.f32 %v3473_v8, %v3473_v8 }
0x19b8   :  { %v3474_v12 = vmul.f32 %v3472_v9, %v3472_v9 }
0x19b9   :  { %v3479_v13 = vsel %vm235_vm2, %v3475_v11, 0.0 }
0x19ba   :  { %3480 = vadd.xlane.f32.xlu0 %v3479_v13  ;;  %v3476_v14 = vsel %vm235_vm2, %v3474_v12, 0.0 }
0x19bb   :  { %3477 = vadd.xlane.f32.xlu1 %v3476_v14 }
0x1a47   :  { %v3481_v37 = vpop.xlane.xlu0 %3480 }
0x1a48   :  { %v3483_v44 = vmul.f32 0.03125, %v3481_v37  ;;  %v3478_v19 = vpop.xlane.xlu1 %3477 }
0x1a49   :  { %v3482_v16 = vmul.f32 0.03125, %v3478_v19 }
0x1a4a   :  { %v3485_v18 = vadd.f32 1e-05, %v3483_v44 }
0x1a4b   :  { %v3484_v45 = vadd.f32 1e-05, %v3482_v16 }
0x1a4c   :  { %4765 = vrsqrt.f32 %v3485_v18 }
0x1a4d   :  { %4767 = vrsqrt.f32 %v3484_v45 }
0x1a56   :  { %v4766_v27 = vpop.eup %4765 }
0x1a57   :  { %v4768_v31 = vpop.eup %4767  ;;  %v3489_v32 = vmul.f32 %v4766_v27, %v3473_v8 }
0x1a58   :  { %v3488_v33 = vmul.f32 %v4768_v31, %v3472_v9 }
0x1a59   :  { %v3495_v38 = vmul.f32 %v3798_v29, %v3489_v32 }
0x1a5a   :  { %v3494_v39 = vmul.f32 %v3798_v29, %v3488_v33 }
0x1a5b   :  { %v3501_v50 = vadd.f32 %v3799_v35, %v3495_v38 }
0x1a5c   :  { %v3500_v28 = vadd.f32 %v3799_v35, %v3494_v39 }
0x1a5e   :  { %4421 = vmatprep.mubr.msk.f32.mxu1 %vm235_vm2, %v3500_v28 }
0x1a5f   :  { %4422 = vmatmul.mubr.msk.f32.vlgmr.msra.gmra.mrb[40].mxu1 %vm235_vm2, %v3501_v50 }
0x1b32   :  { %v4423_v42 = vpop.f32.mrb[40].mxu1 }
0x1b33   :  { %3648 = vst [vmem:[#allocation2 + $0x8] sm:$0xff] %v4423_v42  ;;  %v3638_v43 = vpop.f32.mrb[41].mxu1 }
0x1b34   :  { %3647 = vst [vmem:[#allocation2] sm:$0xff] %v3638_v43 }
0x1b35   :  { %4780 = shalt.err (!%p4777_p4)
}
0x1b36   :  { %s4781_s26 = scalar_lea.hbm %s5723_s17, 256 }
0x1b37   :  { %p4782_p5 = scmp.ne.s32.totalorder %s5723_s17, %s4781_s26  ;;  %p4785_p6 = scmp.lt.u32.totalorder %s4781_s26, %s5723_s17 }
0x1b39   :  { %p4787_p7 = pnand %p4785_p6, %p4782_p5 }
0x1b3b   :  { %4790 = shalt.err (!%p4787_p7)
}
0x1b3c   :  { %s4798_s19 = smov 128   ;;  %s4799_s1 = smov 8  }
0x1b3d   :  { %3660 = dma.vmem_to_hbm [thread:$0]  %s3655_s12, 256, %s5723_s17, [#allocation3], %s4798_s19, %s4798_s19, %s4799_s1  }
0x1b3e   :  { %4791 = dma.done.wait [#allocation3], 256  }
0x1b3f   :  { %4792 = vsyncadd [#allocation3], 4294967040 }
0x1b40   :  { %3664 = vsyncpa [#allocation3], 1 }

</bundles_post_ra>
